<compile_context>
chip_gen: v6e
topology: v6e:2x2x1
jax: 0.10.0
libtpu: 0.0.40
codegen_flags: <defaults>
</compile_context>

<pallas_src>
import jax
import jax.numpy as jnp
import numpy as np
from jax import lax
from jax.experimental import pallas as pl
from jax.experimental.pallas import tpu as pltpu


def bottleneck_kernel(x_ref, w1_ref, s1_ref, b1_ref,
                      w2_ref, s2_ref, b2_ref,
                      w3_ref, s3_ref, b3_ref,
                      o_ref, yp_ref):
    _, _, TH2, W, Cin = x_ref.shape
    TH = TH2 - 2                       # output rows of this tile
    Cmid = w1_ref.shape[1]
    Cout = w3_ref.shape[1]
    R = TH2 * W                        # flattened rows incl. 1-row halo top+bottom

    i = pl.program_id(1)
    last = pl.num_programs(1) - 1

    # ---- conv1 (1x1) + bn1 + relu on all TH+2 rows (halo recomputed) -------
    xf = x_ref[0, 0].reshape(R, Cin)                         # f32
    y1 = jnp.dot(xf.astype(jnp.bfloat16), w1_ref[...],
                 preferred_element_type=jnp.float32)
    y1 = jnp.maximum(y1 * s1_ref[...] + b1_ref[...], 0.0)    # f32 elementwise

    # conv2 zero-pads its *input* (y1), so at the true image border the halo
    # rows must be zero (not conv1(0) = relu(bias)).
    rows = lax.broadcasted_iota(jnp.int32, (R, 1), 0)
    wcol = rows % W
    halo = ((rows < W) & (i == 0)) | ((rows >= (TH + 1) * W) & (i == last))
    y1 = jnp.where(halo, 0.0, y1)

    # ---- build the (R+2, 3*Cmid) conv2 operand in a single VMEM scratch ----
    # Channel block k (= dx) holds y1 shifted by (dx-1) along W; the shift is
    # realized by the store row offset (2-k), with the image left/right border
    # masked in the stored values.
    m0 = jnp.where(wcol == W - 1, 0.0, y1)    # feeds dx=0 (left neighbour)
    m2 = jnp.where(wcol == 0, 0.0, y1)        # feeds dx=2 (right neighbour)
    zero2 = jnp.zeros((2, 3 * Cmid), jnp.float32)
    yp_ref[pl.ds(0, 2), :] = zero2            # cells the offset stores never touch
    yp_ref[pl.ds(R, 2), :] = zero2
    yp_ref[pl.ds(2, R), pl.ds(0, Cmid)] = m0
    yp_ref[pl.ds(1, R), pl.ds(Cmid, Cmid)] = y1
    yp_ref[pl.ds(0, R), pl.ds(2 * Cmid, Cmid)] = m2

    # ---- conv2 (3x3, pad 1) as 3 wide-K (K = 3*Cmid) MXU matmuls -----------
    acc = jnp.dot(yp_ref[pl.ds(1, TH * W), :].astype(jnp.bfloat16),
                  w2_ref[0], preferred_element_type=jnp.float32)
    acc += jnp.dot(yp_ref[pl.ds(1 + W, TH * W), :].astype(jnp.bfloat16),
                   w2_ref[1], preferred_element_type=jnp.float32)
    acc += jnp.dot(yp_ref[pl.ds(1 + 2 * W, TH * W), :].astype(jnp.bfloat16),
                   w2_ref[2], preferred_element_type=jnp.float32)
    y2 = jnp.maximum(acc * s2_ref[...] + b2_ref[...], 0.0)   # f32

    # ---- conv3 (1x1) + bn3 + identity residual + relu ----------------------
    y3 = jnp.dot(y2.astype(jnp.bfloat16), w3_ref[...],
                 preferred_element_type=jnp.float32)
    y3 = y3 * s3_ref[...] + b3_ref[...]
    res = xf[W:(TH + 1) * W]                  # f32 identity residual (Cin == Cout)
    out = jnp.maximum(y3 + res, 0.0)
    o_ref[...] = out.reshape(1, TH, W, Cout).astype(o_ref.dtype)


def bottleneck_pallas(x, params, *, tile_h=8):
    """x: NHWC float32.  Returns NHWC float32."""
    N, H, W, Cin = x.shape
    w1, s1, b1, w2, s2, b2, w3, s3, b3 = params
    Cmid = w1.shape[1]
    Cout = w3.shape[1]
    assert Cin == Cout, "identity residual (downsample=None) needs inplanes == planes*4"
    TH = min(tile_h, H)
    assert H % TH == 0, "H must be a multiple of the row-tile size"
    nT = H // TH

    # bf16 weights for the MXU; 3x3 weight reshaped to (dy, dx*Cin+ci, co) so
    # conv2 becomes 3 wide-K matmuls.  BN scale/bias stay f32.
    w1b = w1.astype(jnp.bfloat16)
    w2b = w2.reshape(3, 3 * Cmid, Cmid).astype(jnp.bfloat16)
    w3b = w3.astype(jnp.bfloat16)

    # Host-side halo materialization: tile i gets image rows [i*TH-1, i*TH+TH]
    # (zero padded at the border), keeping kernel BlockSpecs non-overlapping.
    xp = jnp.pad(x, ((0, 0), (1, 1), (0, 0), (0, 0)))
    x_tiles = jnp.stack([xp[:, i * TH:i * TH + TH + 2] for i in range(nT)], axis=1)

    def const_spec(arr):
        nd = arr.ndim   # constant index_map -> block stays resident, no re-DMA
        return pl.BlockSpec(arr.shape, lambda n, i, nd=nd: (0,) * nd)

    return pl.pallas_call(
        bottleneck_kernel,
        out_shape=jax.ShapeDtypeStruct((N, H, W, Cout), x.dtype),
        grid_spec=pltpu.PrefetchScalarGridSpec(
            num_scalar_prefetch=0,
            grid=(N, nT),
            in_specs=[
                pl.BlockSpec((1, 1, TH + 2, W, Cin), lambda n, i: (n, i, 0, 0, 0)),
                const_spec(w1b), const_spec(s1), const_spec(b1),
                const_spec(w2b), const_spec(s2), const_spec(b2),
                const_spec(w3b), const_spec(s3), const_spec(b3),
            ],
            out_specs=pl.BlockSpec((1, TH, W, Cout), lambda n, i: (n, i, 0, 0)),
            scratch_shapes=[
                pltpu.VMEM(((TH + 2) * W + 2, 3 * Cmid), jnp.float32),
            ],
        ),
        compiler_params=pltpu.CompilerParams(
            # both grid axes write disjoint output tiles -> megacore-shardable
            dimension_semantics=("parallel", "parallel"),
            # explicit limit; re-derive tile_h for v7x's 64 MiB physical VMEM
            vmem_limit_bytes=32 * 1024 * 1024,
        ),
    )(x_tiles, w1b, s1, b1, w2b, s2, b2, w3b, s3, b3)


def bottleneck_ref(x, params):
    """Pure-JAX NHWC reference with the same bf16-operand / f32-accumulate
    numerics as the kernel."""
    w1, s1, b1, w2, s2, b2, w3, s3, b3 = params
    dn = ('NHWC', 'HWIO', 'NHWC')
    bf, f32 = jnp.bfloat16, jnp.float32
    y = lax.conv_general_dilated(x.astype(bf), w1.reshape(1, 1, *w1.shape).astype(bf),
                                 (1, 1), 'VALID', dimension_numbers=dn,
                                 preferred_element_type=f32)
    y = jnp.maximum(y * s1 + b1, 0.0)
    y = lax.conv_general_dilated(y.astype(bf), w2.astype(bf), (1, 1), ((1, 1), (1, 1)),
                                 dimension_numbers=dn, preferred_element_type=f32)
    y = jnp.maximum(y * s2 + b2, 0.0)
    y = lax.conv_general_dilated(y.astype(bf), w3.reshape(1, 1, *w3.shape).astype(bf),
                                 (1, 1), 'VALID', dimension_numbers=dn,
                                 preferred_element_type=f32)
    y = y * s3 + b3
    return jnp.maximum(y + x, 0.0)


if __name__ == "__main__":
    key = jax.random.PRNGKey(0)
    N, H, W = 2, 16, 16
    planes = 32
    inplanes = planes * 4   # identity residual requires inplanes == planes * expansion

    keys = jax.random.split(key, 16)
    # PyTorch-style NCHW input, converted to NHWC for the TPU kernel.
    x_nchw = jax.random.normal(keys[0], (N, inplanes, H, W), jnp.float32)
    x = jnp.transpose(x_nchw, (0, 2, 3, 1))

    def bn_fold(kg, kb, km, kv, c):
        gamma = 1.0 + 0.1 * jax.random.normal(kg, (c,), jnp.float32)
        beta = 0.1 * jax.random.normal(kb, (c,), jnp.float32)
        mean = 0.1 * jax.random.normal(km, (c,), jnp.float32)
        var = jnp.abs(jax.random.normal(kv, (c,), jnp.float32)) + 0.5
        eps = 1e-5  # PyTorch BatchNorm2d default
        scale = gamma / jnp.sqrt(var + eps)
        bias = beta - mean * scale
        return scale.reshape(1, c), bias.reshape(1, c)

    # conv weights in matmul form: 1x1 -> (Cin, Cout); 3x3 -> HWIO (3,3,Cin,Cout)
    w1 = 0.2 * jax.random.normal(keys[1], (inplanes, planes), jnp.float32)
    s1, b1 = bn_fold(keys[2], keys[3], keys[4], keys[5], planes)
    w2 = 0.2 * jax.random.normal(keys[6], (3, 3, planes, planes), jnp.float32)
    s2, b2 = bn_fold(keys[7], keys[8], keys[9], keys[10], planes)
    w3 = 0.2 * jax.random.normal(keys[11], (planes, planes * 4), jnp.float32)
    s3, b3 = bn_fold(keys[12], keys[13], keys[14], keys[15], planes * 4)

    params = (w1, s1, b1, w2, s2, b2, w3, s3, b3)

    out = jax.block_until_ready(bottleneck_pallas(x, params))
    ref = bottleneck_ref(x, params)
    np.testing.assert_allclose(np.asarray(out), np.asarray(ref),
                               rtol=2e-2, atol=2e-2)
    print("KERNEL_OK")
</pallas_src>

<mosaic_0001>
module attributes {stable_mosaic.version = 11 : i64} {
  func.func @bottleneck_kernel(%arg0: i32, %arg1: i32, %arg2: memref<1x1x10x16x128xf32, #tpu.memory_space<vmem>>, %arg3: memref<128x32xbf16, #tpu.memory_space<vmem>>, %arg4: memref<1x32xf32, #tpu.memory_space<vmem>>, %arg5: memref<1x32xf32, #tpu.memory_space<vmem>>, %arg6: memref<3x96x32xbf16, #tpu.memory_space<vmem>>, %arg7: memref<1x32xf32, #tpu.memory_space<vmem>>, %arg8: memref<1x32xf32, #tpu.memory_space<vmem>>, %arg9: memref<32x128xbf16, #tpu.memory_space<vmem>>, %arg10: memref<1x128xf32, #tpu.memory_space<vmem>>, %arg11: memref<1x128xf32, #tpu.memory_space<vmem>>, %arg12: memref<1x8x16x128xf32, #tpu.memory_space<vmem>>, %arg13: memref<162x96xf32, #tpu.memory_space<vmem>>) attributes {dimension_semantics = [#tpu.dimension_semantics<parallel>, #tpu.dimension_semantics<parallel>], iteration_bounds = array<i64: 2, 2>, scalar_prefetch = 0 : i64, scratch_operands = 1 : i64, tpu.core_type = #tpu.core_type<tc>, window_params = [{transform_indices = @transform_0, window_bounds = array<i64: 1, 1, 10, 16, 128>}, {pipeline_mode = #tpu.pipeline_mode<synchronous>, transform_indices = @transform_1, window_bounds = array<i64: 128, 32>}, {pipeline_mode = #tpu.pipeline_mode<synchronous>, transform_indices = @transform_2, window_bounds = array<i64: 1, 32>}, {pipeline_mode = #tpu.pipeline_mode<synchronous>, transform_indices = @transform_3, window_bounds = array<i64: 1, 32>}, {pipeline_mode = #tpu.pipeline_mode<synchronous>, transform_indices = @transform_4, window_bounds = array<i64: 3, 96, 32>}, {pipeline_mode = #tpu.pipeline_mode<synchronous>, transform_indices = @transform_5, window_bounds = array<i64: 1, 32>}, {pipeline_mode = #tpu.pipeline_mode<synchronous>, transform_indices = @transform_6, window_bounds = array<i64: 1, 32>}, {pipeline_mode = #tpu.pipeline_mode<synchronous>, transform_indices = @transform_7, window_bounds = array<i64: 32, 128>}, {pipeline_mode = #tpu.pipeline_mode<synchronous>, transform_indices = @transform_8, window_bounds = array<i64: 1, 128>}, {pipeline_mode = #tpu.pipeline_mode<synchronous>, transform_indices = @transform_9, window_bounds = array<i64: 1, 128>}, {transform_indices = @transform_10, window_bounds = array<i64: 1, 8, 16, 128>}]} {
    %c0 = arith.constant 0 : index
    %c0_0 = arith.constant 0 : index
    %c0_1 = arith.constant 0 : index
    %c0_2 = arith.constant 0 : index
    %c0_3 = arith.constant 0 : index
    %0 = vector.load %arg2[%c0, %c0_0, %c0_1, %c0_2, %c0_3] : memref<1x1x10x16x128xf32, #tpu.memory_space<vmem>>, vector<1x1x10x16x128xf32>
    %1 = vector.shape_cast %0 : vector<1x1x10x16x128xf32> to vector<10x16x128xf32>
    %2 = vector.shape_cast %1 : vector<10x16x128xf32> to vector<160x128xf32>
    %3 = arith.truncf %2 : vector<160x128xf32> to vector<160x128xbf16>
    %c0_4 = arith.constant 0 : index
    %c0_5 = arith.constant 0 : index
    %4 = vector.load %arg3[%c0_4, %c0_5] : memref<128x32xbf16, #tpu.memory_space<vmem>>, vector<128x32xbf16>
    %cst = arith.constant dense<0.000000e+00> : vector<160x32xf32>
    %5 = tpu.matmul %3, %4, %cst {dimension_numbers = #tpu.dot_dimension_numbers<[1], [0], [0], [1], [0, 0, 1, 1], [], []>} : vector<160x128xbf16>, vector<128x32xbf16>, vector<160x32xf32> -> vector<160x32xf32>
    %c0_6 = arith.constant 0 : index
    %c0_7 = arith.constant 0 : index
    %6 = vector.load %arg4[%c0_6, %c0_7] : memref<1x32xf32, #tpu.memory_space<vmem>>, vector<1x32xf32>
    %7 = vector.broadcast %6 : vector<1x32xf32> to vector<160x32xf32>
    %8 = arith.mulf %5, %7 : vector<160x32xf32>
    %c0_8 = arith.constant 0 : index
    %c0_9 = arith.constant 0 : index
    %9 = vector.load %arg5[%c0_8, %c0_9] : memref<1x32xf32, #tpu.memory_space<vmem>>, vector<1x32xf32>
    %10 = vector.broadcast %9 : vector<1x32xf32> to vector<160x32xf32>
    %11 = arith.addf %8, %10 : vector<160x32xf32>
    %cst_10 = arith.constant 0.000000e+00 : f32
    %12 = vector.broadcast %cst_10 : f32 to vector<160x32xf32>
    %13 = arith.maximumf %11, %12 : vector<160x32xf32>
    %14 = tpu.iota {dimensions = array<i32: 0>} : vector<160x1xi32>
    %c16_i32 = arith.constant 16 : i32
    %c0_i32 = arith.constant 0 : i32
    %15 = arith.cmpi eq, %c16_i32, %c0_i32 : i32
    %c1_i32 = arith.constant 1 : i32
    %16 = arith.select %15, %c1_i32, %c16_i32 : i32
    %17 = vector.broadcast %16 : i32 to vector<160x1xi32>
    %18 = arith.remsi %14, %17 : vector<160x1xi32>
    %c0_i32_11 = arith.constant 0 : i32
    %19 = vector.broadcast %c0_i32_11 : i32 to vector<160x1xi32>
    %20 = arith.cmpi ne, %18, %19 : vector<160x1xi32>
    %c0_i32_12 = arith.constant 0 : i32
    %21 = vector.broadcast %c0_i32_12 : i32 to vector<160x1xi32>
    %22 = arith.cmpi slt, %18, %21 : vector<160x1xi32>
    %c0_i32_13 = arith.constant 0 : i32
    %23 = arith.cmpi slt, %16, %c0_i32_13 : i32
    %24 = vector.broadcast %23 : i1 to vector<160x1xi1>
    %25 = vector.broadcast %24 : vector<160x1xi1> to vector<160x1xi1>
    %26 = arith.xori %22, %25 : vector<160x1xi1>
    %27 = arith.andi %26, %20 : vector<160x1xi1>
    %28 = vector.broadcast %16 : i32 to vector<160x1xi32>
    %29 = arith.addi %18, %28 : vector<160x1xi32>
    %30 = arith.select %27, %29, %18 : vector<160x1xi1>, vector<160x1xi32>
    %c16_i32_14 = arith.constant 16 : i32
    %31 = vector.broadcast %c16_i32_14 : i32 to vector<160x1xi32>
    %32 = arith.cmpi slt, %14, %31 : vector<160x1xi32>
    %c0_i32_15 = arith.constant 0 : i32
    %33 = arith.cmpi eq, %arg1, %c0_i32_15 : i32
    %34 = vector.broadcast %33 : i1 to vector<160x1xi1>
    %35 = arith.andi %32, %34 : vector<160x1xi1>
    %c144_i32 = arith.constant 144 : i32
    %36 = vector.broadcast %c144_i32 : i32 to vector<160x1xi32>
    %37 = arith.cmpi sge, %14, %36 : vector<160x1xi32>
    %c1_i32_16 = arith.constant 1 : i32
    %38 = arith.cmpi eq, %arg1, %c1_i32_16 : i32
    %39 = vector.broadcast %38 : i1 to vector<160x1xi1>
    %40 = arith.andi %37, %39 : vector<160x1xi1>
    %41 = arith.ori %35, %40 : vector<160x1xi1>
    %cst_17 = arith.constant 0.000000e+00 : f32
    %42 = vector.shape_cast %41 : vector<160x1xi1> to vector<160x1xi1>
    %43 = vector.broadcast %42 : vector<160x1xi1> to vector<160x32xi1>
    %44 = vector.broadcast %cst_17 : f32 to vector<160x32xf32>
    %45 = arith.select %43, %44, %13 : vector<160x32xi1>, vector<160x32xf32>
    %c15_i32 = arith.constant 15 : i32
    %46 = vector.broadcast %c15_i32 : i32 to vector<160x1xi32>
    %47 = arith.cmpi eq, %30, %46 : vector<160x1xi32>
    %cst_18 = arith.constant 0.000000e+00 : f32
    %48 = vector.shape_cast %47 : vector<160x1xi1> to vector<160x1xi1>
    %49 = vector.broadcast %48 : vector<160x1xi1> to vector<160x32xi1>
    %50 = vector.broadcast %cst_18 : f32 to vector<160x32xf32>
    %51 = arith.select %49, %50, %45 : vector<160x32xi1>, vector<160x32xf32>
    %c0_i32_19 = arith.constant 0 : i32
    %52 = vector.broadcast %c0_i32_19 : i32 to vector<160x1xi32>
    %53 = arith.cmpi eq, %30, %52 : vector<160x1xi32>
    %cst_20 = arith.constant 0.000000e+00 : f32
    %54 = vector.shape_cast %53 : vector<160x1xi1> to vector<160x1xi1>
    %55 = vector.broadcast %54 : vector<160x1xi1> to vector<160x32xi1>
    %56 = vector.broadcast %cst_20 : f32 to vector<160x32xf32>
    %57 = arith.select %55, %56, %45 : vector<160x32xi1>, vector<160x32xf32>
    %cst_21 = arith.constant 0.000000e+00 : f32
    %58 = vector.broadcast %cst_21 : f32 to vector<2x96xf32>
    %c0_22 = arith.constant 0 : index
    %c0_23 = arith.constant 0 : index
    %59 = vector.load %arg13[%c0_22, %c0_23] : memref<162x96xf32, #tpu.memory_space<vmem>>, vector<2x96xf32>
    tpu.vector_store %arg13[%c0_22, %c0_23], %58 {strides = array<i32>} : memref<162x96xf32, #tpu.memory_space<vmem>>, vector<2x96xf32>,
    %c160 = arith.constant 160 : index
    %c0_24 = arith.constant 0 : index
    %60 = vector.load %arg13[%c160, %c0_24] : memref<162x96xf32, #tpu.memory_space<vmem>>, vector<2x96xf32>
    tpu.vector_store %arg13[%c160, %c0_24], %58 {strides = array<i32>} : memref<162x96xf32, #tpu.memory_space<vmem>>, vector<2x96xf32>,
    %c2 = arith.constant 2 : index
    %c0_25 = arith.constant 0 : index
    %61 = vector.load %arg13[%c2, %c0_25] : memref<162x96xf32, #tpu.memory_space<vmem>>, vector<160x32xf32>
    tpu.vector_store %arg13[%c2, %c0_25], %51 {strides = array<i32>} : memref<162x96xf32, #tpu.memory_space<vmem>>, vector<160x32xf32>,
    %c1 = arith.constant 1 : index
    %c32 = arith.constant 32 : index
    %62 = vector.load %arg13[%c1, %c32] : memref<162x96xf32, #tpu.memory_space<vmem>>, vector<160x32xf32>
    tpu.vector_store %arg13[%c1, %c32], %45 {strides = array<i32>} : memref<162x96xf32, #tpu.memory_space<vmem>>, vector<160x32xf32>,
    %c0_26 = arith.constant 0 : index
    %c64 = arith.constant 64 : index
    %63 = vector.load %arg13[%c0_26, %c64] : memref<162x96xf32, #tpu.memory_space<vmem>>, vector<160x32xf32>
    tpu.vector_store %arg13[%c0_26, %c64], %57 {strides = array<i32>} : memref<162x96xf32, #tpu.memory_space<vmem>>, vector<160x32xf32>,
    %c1_27 = arith.constant 1 : index
    %c0_28 = arith.constant 0 : index
    %64 = vector.load %arg13[%c1_27, %c0_28] : memref<162x96xf32, #tpu.memory_space<vmem>>, vector<128x96xf32>
    %65 = arith.truncf %64 : vector<128x96xf32> to vector<128x96xbf16>
    %c0_29 = arith.constant 0 : index
    %c0_30 = arith.constant 0 : index
    %c0_31 = arith.constant 0 : index
    %66 = vector.load %arg6[%c0_29, %c0_30, %c0_31] : memref<3x96x32xbf16, #tpu.memory_space<vmem>>, vector<1x96x32xbf16>
    %67 = vector.shape_cast %66 : vector<1x96x32xbf16> to vector<96x32xbf16>
    %cst_32 = arith.constant dense<0.000000e+00> : vector<128x32xf32>
    %68 = tpu.matmul %65, %67, %cst_32 {dimension_numbers = #tpu.dot_dimension_numbers<[1], [0], [0], [1], [0, 0, 1, 1], [], []>} : vector<128x96xbf16>, vector<96x32xbf16>, vector<128x32xf32> -> vector<128x32xf32>
    %c17 = arith.constant 17 : index
    %c0_33 = arith.constant 0 : index
    %69 = vector.load %arg13[%c17, %c0_33] : memref<162x96xf32, #tpu.memory_space<vmem>>, vector<128x96xf32>
    %70 = arith.truncf %69 : vector<128x96xf32> to vector<128x96xbf16>
    %c1_34 = arith.constant 1 : index
    %c0_35 = arith.constant 0 : index
    %c0_36 = arith.constant 0 : index
    %71 = vector.load %arg6[%c1_34, %c0_35, %c0_36] : memref<3x96x32xbf16, #tpu.memory_space<vmem>>, vector<1x96x32xbf16>
    %72 = vector.shape_cast %71 : vector<1x96x32xbf16> to vector<96x32xbf16>
    %cst_37 = arith.constant dense<0.000000e+00> : vector<128x32xf32>
    %73 = tpu.matmul %70, %72, %cst_37 {dimension_numbers = #tpu.dot_dimension_numbers<[1], [0], [0], [1], [0, 0, 1, 1], [], []>} : vector<128x96xbf16>, vector<96x32xbf16>, vector<128x32xf32> -> vector<128x32xf32>
    %74 = arith.addf %68, %73 : vector<128x32xf32>
    %c33 = arith.constant 33 : index
    %c0_38 = arith.constant 0 : index
    %75 = vector.load %arg13[%c33, %c0_38] : memref<162x96xf32, #tpu.memory_space<vmem>>, vector<128x96xf32>
    %76 = arith.truncf %75 : vector<128x96xf32> to vector<128x96xbf16>
    %c2_39 = arith.constant 2 : index
    %c0_40 = arith.constant 0 : index
    %c0_41 = arith.constant 0 : index
    %77 = vector.load %arg6[%c2_39, %c0_40, %c0_41] : memref<3x96x32xbf16, #tpu.memory_space<vmem>>, vector<1x96x32xbf16>
    %78 = vector.shape_cast %77 : vector<1x96x32xbf16> to vector<96x32xbf16>
    %cst_42 = arith.constant dense<0.000000e+00> : vector<128x32xf32>
    %79 = tpu.matmul %76, %78, %cst_42 {dimension_numbers = #tpu.dot_dimension_numbers<[1], [0], [0], [1], [0, 0, 1, 1], [], []>} : vector<128x96xbf16>, vector<96x32xbf16>, vector<128x32xf32> -> vector<128x32xf32>
    %80 = arith.addf %74, %79 : vector<128x32xf32>
    %c0_43 = arith.constant 0 : index
    %c0_44 = arith.constant 0 : index
    %81 = vector.load %arg7[%c0_43, %c0_44] : memref<1x32xf32, #tpu.memory_space<vmem>>, vector<1x32xf32>
    %82 = vector.broadcast %81 : vector<1x32xf32> to vector<128x32xf32>
    %83 = arith.mulf %80, %82 : vector<128x32xf32>
    %c0_45 = arith.constant 0 : index
    %c0_46 = arith.constant 0 : index
    %84 = vector.load %arg8[%c0_45, %c0_46] : memref<1x32xf32, #tpu.memory_space<vmem>>, vector<1x32xf32>
    %85 = vector.broadcast %84 : vector<1x32xf32> to vector<128x32xf32>
    %86 = arith.addf %83, %85 : vector<128x32xf32>
    %cst_47 = arith.constant 0.000000e+00 : f32
    %87 = vector.broadcast %cst_47 : f32 to vector<128x32xf32>
    %88 = arith.maximumf %86, %87 : vector<128x32xf32>
    %89 = arith.truncf %88 : vector<128x32xf32> to vector<128x32xbf16>
    %c0_48 = arith.constant 0 : index
    %c0_49 = arith.constant 0 : index
    %90 = vector.load %arg9[%c0_48, %c0_49] : memref<32x128xbf16, #tpu.memory_space<vmem>>, vector<32x128xbf16>
    %cst_50 = arith.constant dense<0.000000e+00> : vector<128x128xf32>
    %91 = tpu.matmul %89, %90, %cst_50 {dimension_numbers = #tpu.dot_dimension_numbers<[1], [0], [0], [1], [0, 0, 1, 1], [], []>} : vector<128x32xbf16>, vector<32x128xbf16>, vector<128x128xf32> -> vector<128x128xf32>
    %c0_51 = arith.constant 0 : index
    %c0_52 = arith.constant 0 : index
    %92 = vector.load %arg10[%c0_51, %c0_52] : memref<1x128xf32, #tpu.memory_space<vmem>>, vector<1x128xf32>
    %93 = vector.broadcast %92 : vector<1x128xf32> to vector<128x128xf32>
    %94 = arith.mulf %91, %93 : vector<128x128xf32>
    %c0_53 = arith.constant 0 : index
    %c0_54 = arith.constant 0 : index
    %95 = vector.load %arg11[%c0_53, %c0_54] : memref<1x128xf32, #tpu.memory_space<vmem>>, vector<1x128xf32>
    %96 = vector.broadcast %95 : vector<1x128xf32> to vector<128x128xf32>
    %97 = arith.addf %94, %96 : vector<128x128xf32>
    %98 = vector.extract_strided_slice %2 {offsets = [16, 0], sizes = [128, 128], strides = [1, 1]} : vector<160x128xf32> to vector<128x128xf32>
    %99 = arith.addf %97, %98 : vector<128x128xf32>
    %cst_55 = arith.constant 0.000000e+00 : f32
    %100 = vector.broadcast %cst_55 : f32 to vector<128x128xf32>
    %101 = arith.maximumf %99, %100 : vector<128x128xf32>
    %102 = vector.shape_cast %101 : vector<128x128xf32> to vector<1x8x16x128xf32>
    %c0_56 = arith.constant 0 : index
    %c0_57 = arith.constant 0 : index
    %c0_58 = arith.constant 0 : index
    %c0_59 = arith.constant 0 : index
    %103 = vector.load %arg12[%c0_56, %c0_57, %c0_58, %c0_59] : memref<1x8x16x128xf32, #tpu.memory_space<vmem>>, vector<1x8x16x128xf32>
    tpu.vector_store %arg12[%c0_56, %c0_57, %c0_58, %c0_59], %102 {strides = array<i32>} : memref<1x8x16x128xf32, #tpu.memory_space<vmem>>, vector<1x8x16x128xf32>,
    return
  }
  func.func @transform_0(%arg0: i32, %arg1: i32) -> (i32, i32, i32, i32, i32) {
    %c0_i32 = arith.constant 0 : i32
    %c0_i32_0 = arith.constant 0 : i32
    %c0_i32_1 = arith.constant 0 : i32
    %c0_i32_2 = arith.constant 0 : i32
    return %arg0, %arg1, %c0_i32, %c0_i32_0, %c0_i32_1 : i32, i32, i32, i32, i32
  }
  func.func @transform_1(%arg0: i32, %arg1: i32) -> (i32, i32) {
    %c0_i32 = arith.constant 0 : i32
    %c0_i32_0 = arith.constant 0 : i32
    %c0_i32_1 = arith.constant 0 : i32
    return %c0_i32, %c0_i32_0 : i32, i32
  }
  func.func @transform_2(%arg0: i32, %arg1: i32) -> (i32, i32) {
    %c0_i32 = arith.constant 0 : i32
    %c0_i32_0 = arith.constant 0 : i32
    %c0_i32_1 = arith.constant 0 : i32
    return %c0_i32, %c0_i32_0 : i32, i32
  }
  func.func @transform_3(%arg0: i32, %arg1: i32) -> (i32, i32) {
    %c0_i32 = arith.constant 0 : i32
    %c0_i32_0 = arith.constant 0 : i32
    %c0_i32_1 = arith.constant 0 : i32
    return %c0_i32, %c0_i32_0 : i32, i32
  }
  func.func @transform_4(%arg0: i32, %arg1: i32) -> (i32, i32, i32) {
    %c0_i32 = arith.constant 0 : i32
    %c0_i32_0 = arith.constant 0 : i32
    %c0_i32_1 = arith.constant 0 : i32
    %c0_i32_2 = arith.constant 0 : i32
    return %c0_i32, %c0_i32_0, %c0_i32_1 : i32, i32, i32
  }
  func.func @transform_5(%arg0: i32, %arg1: i32) -> (i32, i32) {
    %c0_i32 = arith.constant 0 : i32
    %c0_i32_0 = arith.constant 0 : i32
    %c0_i32_1 = arith.constant 0 : i32
    return %c0_i32, %c0_i32_0 : i32, i32
  }
  func.func @transform_6(%arg0: i32, %arg1: i32) -> (i32, i32) {
    %c0_i32 = arith.constant 0 : i32
    %c0_i32_0 = arith.constant 0 : i32
    %c0_i32_1 = arith.constant 0 : i32
    return %c0_i32, %c0_i32_0 : i32, i32
  }
  func.func @transform_7(%arg0: i32, %arg1: i32) -> (i32, i32) {
    %c0_i32 = arith.constant 0 : i32
    %c0_i32_0 = arith.constant 0 : i32
    %c0_i32_1 = arith.constant 0 : i32
    return %c0_i32, %c0_i32_0 : i32, i32
  }
  func.func @transform_8(%arg0: i32, %arg1: i32) -> (i32, i32) {
    %c0_i32 = arith.constant 0 : i32
    %c0_i32_0 = arith.constant 0 : i32
    %c0_i32_1 = arith.constant 0 : i32
    return %c0_i32, %c0_i32_0 : i32, i32
  }
  func.func @transform_9(%arg0: i32, %arg1: i32) -> (i32, i32) {
    %c0_i32 = arith.constant 0 : i32
    %c0_i32_0 = arith.constant 0 : i32
    %c0_i32_1 = arith.constant 0 : i32
    return %c0_i32, %c0_i32_0 : i32, i32
  }
  func.func @transform_10(%arg0: i32, %arg1: i32) -> (i32, i32, i32, i32) {
    %c0_i32 = arith.constant 0 : i32
    %c0_i32_0 = arith.constant 0 : i32
    %c0_i32_1 = arith.constant 0 : i32
    return %arg0, %arg1, %c0_i32, %c0_i32_0 : i32, i32, i32, i32
  }
}

</mosaic_0001>

<bundles_post_ra>
// kernel: tpu_custom_call.1
= control target key start
LH: loop header
LB: loop body
LE: loop exit
PB: predicated region body
PF: predicated region fallthrough
CT: control target
= control target key end

     0   :  { %s3896_s0 = inlined_call_operand.hbm [shape: f32[2,2,10,16,128], index: 0, kind: input, shape index: {}]   ;;  %s3897_s1 = inlined_call_operand.vmem [shape: bf16[128,32], index: 1, kind: input, shape index: {}]   ;;  %s3898_s2 = inlined_call_operand.vmem [shape: f32[1,32], index: 2, kind: input, shape index: {}]   ;;  %s3899_s3 = inlined_call_operand.vmem [shape: f32[1,32], index: 3, kind: input, shape index: {}]   ;;  %s3900_s4 = inlined_call_operand.vmem [shape: bf16[3,96,32], index: 4, kind: input, shape index: {}]   ;;  %s3901_s5 = inlined_call_operand.vmem [shape: f32[1,32], index: 5, kind: input, shape index: {}]   ;;  %s3902_s6 = inlined_call_operand.vmem [shape: f32[1,32], index: 6, kind: input, shape index: {}]   ;;  %s3903_s7 = inlined_call_operand.vmem [shape: bf16[32,128], index: 7, kind: input, shape index: {}]   ;;  %s3904_s8 = inlined_call_operand.vmem [shape: f32[1,128], index: 8, kind: input, shape index: {}]   ;;  %s3905_s9 = inlined_call_operand.vmem [shape: f32[1,128], index: 9, kind: input, shape index: {}]   ;;  %s3906_s10 = inlined_call_operand.hbm [shape: f32[2,16,16,128], index: 10, kind: output, shape index: {}]  }
   0x1   :  { %3916 = sst [smem:[#allocation18_spill]] %s3905_s9 }
   0x2   :  { %3917 = sst [smem:[#allocation19_spill]] %s3906_s10 }
   0x3   :  { %15 = vsyncpa [#allocation4], 0 }
   0x4   :  { %17 = vsyncpa [#allocation4 + $0x1], 0 }
   0x5   :  { %18 = vsyncpa [#allocation5], 0 }
   0x6   :  { %20 = vsyncpa [#allocation5 + $0x1], 0  ;;  %s3100_s13 = smov 0   ;;  %s3102_s14 = smov 0  }
   0x7   :  { %s3104_s15 = smov 0   ;;  %s3106_s16 = smov 0  }
   0x8   :  { %s3108_s17 = smov 0   ;;  %s3110_s18 = smov 0  }
   0x9   :  { %s3112_s19 = smov 0   ;;  %s3114_s20 = smov 0  }
   0xa LB: > { %3918 = sst [smem:[#allocation9_spill]] %s3006_s13  ;;  %s2458_s21 = sadd.s32 4294967295, %s3034_s20   ;;  %s3034_s20 = sphi %s3114_s20, %s26_s20   ;;  %s3030_s19 = sphi %s3112_s19, %s3972_s19   ;;  %s3026_s18 = sphi %s3110_s18, %s3971_s18   ;;  %s3022_s17 = sphi %s3108_s17, %s3970_s17   ;;  %s3018_s16 = sphi %s3106_s16, %s3976_s16   ;;  %s3014_s15 = sphi %s3104_s15, %s3975_s15   ;;  %s3010_s14 = sphi %s3102_s14, %s3974_s14   ;;  %s3006_s13 = sphi %s3100_s13, %s3973_s13  }
   0xb   : > { %3919 = sst [smem:[#allocation10_spill]] %s3022_s17  ;;  %s2459_s22 = sadd.s32 4294967294, %s3034_s20  }
   0xc   : > { %3920 = sst [smem:[#allocation11_spill]] %s3026_s18  ;;  %s35_s23 = sadd.s32 1, %s3026_s18 }
   0xd   : > { %3921 = sst [smem:[#allocation12_spill]] %s3030_s19  ;;  %s38_s24 = sadd.s32 1, %s3030_s19 }
   0xe   : > { %p36_p0 = scmp.ge.s32.totalorder %s35_s23, 2  ;;  %s47_s25 = sadd.s32 1, %s3014_s15 }
   0xf   : > { %p54_p1 = scmp.ne.s32.totalorder %s3014_s15, %s3010_s14  ;;  %p55_p2 = scmp.eq.s32.totalorder %s3034_s20, 0 }
  0x10   : > { %s3978_s23 = smov (%p36_p0, %s35_s23), 0  ;;  %s3980_s24 = smov (!%p36_p0, %s38_s24), %s3030_s19 }
  0x11   : > { %3922 = sst [smem:[#allocation13_spill]] %s3978_s23  ;;  %s43_s26 = ssub.s32 %s3026_s18, %s3978_s23 }
  0x12   : > { %p3153_p3 = por %p55_p2, %p54_p1  ;;  %p40_p4 = scmp.ge.s32.totalorder %s3980_s24, 2 }
  0x13   : > { %p60_p5 = scmp.ne.s32.totalorder %s3010_s14, %s3006_s13  ;;  %p61_p6 = scmp.eq.s32.totalorder %s2458_s21, 0 }
  0x14   : > { %p275_p7 = scmp.eq.s32.totalorder %s2458_s21, 3  ;;  %s3982_s24 = smov (%p40_p4, %s3980_s24), 0 }
  0x15   : > { %3924 = sst [smem:[#allocation14_spill]] %s3982_s24  ;;  %p3161_p8 = por %p61_p6, %p60_p5 }
  0x16   : > { %p3165_p9 = por %p275_p7, %p54_p1  ;;  %s42_s30 = ssub.s32 %s3030_s19, %s3982_s24 }
  0x17   : > { %p281_p10 = scmp.eq.s32.totalorder %s2459_s22, 3  ;;  %s44_s11 = sor.u32 %s43_s26, %s42_s30 }
  0x18   : > { %s3926_s29 = scalar_select %p3165_p9, 1, 0 }
  0x19   : > { %p45_p11 = scmp.eq.s32.totalorder %s44_s11, 0  ;;  %p3171_p12 = por %p281_p10, %p60_p5 }
  0x1a   : > { %3927 = sst [smem:[#allocation15_spill]] %s3926_s29  ;;  %p2793_p13 = scmp.lt.s32.totalorder %s3034_s20, 4 }
  0x1b   : > { %s3928_s12 = scalar_select %p3171_p12, 1, 0 }
  0x1c   : > { %s328_s21 = sand.u32 1, %s3014_s15   ;;  %s2778_s10 = smul.u32 20, %s3026_s18 }
  0x1d   : > { %3929 = sst [smem:[#allocation16_spill]] %s3928_s12  ;;  %s2777_s13 = smul.u32 160, %s328_s21 }
  0x1e   : > { %s3178_s23 = scalar_select %p45_p11, %s3014_s15, %s47_s25  }
  0x1f   : > { %p3183_p0 = pnand %p2793_p13, %p3153_p3  ;;  %s2779_s24 = smul.u32 40, %s3030_s19 }
  0x20   : > { %3930 = sst [smem:[#allocation17_spill]] %s3178_s23  ;;  %s332_s22 = scalar_lea.vmem [#allocation3], %s2777_s13 }
  0x21   : > { %s341_s26 = sshll.u32 %s332_s22, 4  ;;  %s338_s30 = sadd.s32 %s2779_s24, %s2778_s10  ;;  %s342_s26 = int_to_ptr.vmem [resolvable:$true] %s341_s26 }
  0x22   : > { %s2462_s11 = sshll.u32 %s338_s30, 7  ;;  %s329_s25 = scalar_lea.sflag [#allocation4], %s328_s21 }
  0x23   : > { %s340_s9 = scalar_lea.hbm %s3896_s0, %s2462_s11  ;;  %p2912_p1 = pneg %p3183_p0 }
  0x24   : > { %s2923_s18 = scalar_lea.vmem %s342_s26, 2560  ;;  %s3036_s27 = smov [#allocation3]  }
  0x25   : > { %p2924_p2 = scmp.ne.s32.totalorder %s342_s26, %s2923_s18  ;;  %s2928_s23 = sshll.u32 %s3036_s27, 4  ;;  %s2929_s23 = int_to_ptr.vmem [resolvable:$false] %s2928_s23 }
  0x26   : > { %s2930_s19 = scalar_lea.vmem %s2929_s23, 5120  ;;  %p2931_p5 = scmp.lt.s32.totalorder %s342_s26, %s2929_s23 }
  0x27   : > { %p2926_p3 = pnand %p2924_p2, %p2912_p1  ;;  %p2932_p6 = scmp.lt.s32.totalorder %s2930_s19, %s2923_s18 }
  0x29   : > { %p2927_p4 = pneg %p2926_p3  ;;  %p2933_p7 = por %p2932_p6, %p2931_p5 }
  0x2b   : > { %p2934_p10 = pnand %p2933_p7, %p2927_p4 }
  0x2d   : > { %2937 = shalt.err (!%p2934_p10)
}
  0x2e   : > { %s3037_s10 = smov 128   ;;  %s3038_s13 = smov 8  }
  0x2f   : > { %2788 = dma.hbm_to_vmem [thread:$0]  (!%p3183_p0), %s340_s9, 2560, %s342_s26, %s329_s25, %s3037_s10, %s3037_s10, %s3038_s13  }
  0x30   : > { %p2463_p11 = scmp.ge.s32.totalorder %s3034_s20, 1  ;;  %p349_p13 = scmp.lt.s32.totalorder %s3034_s20, 5 }
  0x32   : > { %p350_p1 = pnand %p2463_p11, %p349_p13 }
  0x33   : > { %s3198_s24 = sand.u32 (!%p350_p1), 1, %s3010_s14  }
  0x34   : > { %353 = sbr.rel (%p350_p1) target bundleno = 950 (0x3b6), region = 60  ;;  %s356_s19 = scalar_lea.sflag (!%p350_p1), [#allocation4], %s3198_s24 }
  0x35   : > { %s2780_s18 = smul.u32 (!%p350_p1), 160, %s3198_s24 }
  0x37   : > { %s3202_s23 = scalar_lea.vmem (!%p350_p1), [#allocation3], %s2780_s18 }
  0x39   : > { %2997 = dma.done.wait (%p3161_p8), %s356_s19, 2560  }
  0x3a   : > { %2999 = vsyncadd (%p3161_p8), %s356_s19, 4294964736  ;;  %v2866_v0 = vld [vmem:[%s3897_s1 + $0x38] sm:$0xff]   ;;  %v2867_v1 = vld [vmem:[%s3897_s1 + $0x30] sm:$0xff]   ;;  %vm1268_vm0 = vcmask 779264   ;;  %v3039_v38 = vmov 0.0   ;;  %v679_v39 = vlaneseq  ;;  %p960_p8 = scmp.eq.s32.totalorder %s3018_s16, 0 }
  0x3b   : > { %2633 = vmatprep.subr.bf16.mxu0 %v2866_v0  ;;  %v2868_v2 = vld [vmem:[%s3897_s1 + $0x28] sm:$0xff]   ;;  %v2869_v3 = vld [vmem:[%s3897_s1 + $0x20] sm:$0xff]   ;;  %v399_v5 = vld [vmem:[%s3202_s23 + $0x8] sm:$0xff]  ;;  %1270 = vst.msk [vmem:[#allocation2 + $0xa0] sm:$0x3] %vm1268_vm0, %v3039_v38  ;;  %vm1271_vm1 = vcmask 261120  }
  0x3c   : > { %2634 = vmatpush3.bf16.msra.mxu0 %v2866_v0  ;;  %v398_v4 = vld [vmem:[%s3202_s23] sm:$0xff]  ;;  %v2870_v7 = vld [vmem:[%s3897_s1 + $0x18] sm:$0xff]   ;;  %v2871_v8 = vld [vmem:[%s3897_s1 + $0x10] sm:$0xff]   ;;  %1269 = vst.msk [vmem:[#allocation2] sm:$0x3] %vm1268_vm0, %v3039_v38  ;;  %v3252_v40 = vshrl.u32 %v679_v39, 7 }
  0x3d   : > { %2635 = vmatprep.subr.bf16.mxu0 %v2867_v1  ;;  %v418_v6 = vpack.c.bf16 %v399_v5, %v398_v4  ;;  %v2872_v9 = vld [vmem:[%s3897_s1 + $0x8] sm:$0xff]   ;;  %v2873_v10 = vld [vmem:[%s3897_s1] sm:$0xff]   ;;  %v400_v11 = vld [vmem:[%s3202_s23 + $0x10] sm:$0xff]  ;;  %s961_s29 = scalar_select %p960_p8, 1, 0 }
  0x3e   : > { %v401_v12 = vld [vmem:[%s3202_s23 + $0x18] sm:$0xff]  ;;  %v402_v13 = vld [vmem:[%s3202_s23 + $0x20] sm:$0xff]  ;;  %v403_v14 = vld [vmem:[%s3202_s23 + $0x28] sm:$0xff]  ;;  %v682_v42 = vadd.s32 16, %v3252_v40  ;;  %v683_v45 = vadd.s32 24, %v3252_v40  ;;  %v681_v48 = vadd.s32 8, %v3252_v40 }
  0x3f   : > { %2649 = vmatprep.mubr.bf16.mxu0 %v418_v6  ;;  %v419_v15 = vpack.c.bf16 %v401_v12, %v400_v11  ;;  %v420_v16 = vpack.c.bf16 %v403_v14, %v402_v13  ;;  %v404_v17 = vld [vmem:[%s3202_s23 + $0x30] sm:$0xff]  ;;  %v405_v18 = vld [vmem:[%s3202_s23 + $0x38] sm:$0xff]  ;;  %v406_v19 = vld [vmem:[%s3202_s23 + $0x40] sm:$0xff]  ;;  %v962_v52 = vstv %s961_s29  ;;  %v686_v55 = vadd.s32 48, %v3252_v40  ;;  %s3040_s26 = smov 32   ;;  %s3041_s25 = smov 64  }
  0x40   : > { %2636 = vmatpush3.bf16.msra.mxu0 %v2867_v1  ;;  %v407_v20 = vld [vmem:[%s3202_s23 + $0x48] sm:$0xff]  ;;  %v421_v21 = vpack.c.bf16 %v405_v18, %v404_v17  ;;  %v408_v23 = vld [vmem:[%s3202_s23 + $0x50] sm:$0xff]  ;;  %v409_v24 = vld [vmem:[%s3202_s23 + $0x58] sm:$0xff]  ;;  %v718_v51 = vand.u32 15, %v682_v42  ;;  %v725_v54 = vand.u32 15, %v683_v45  ;;  %v711_v60 = vand.u32 15, %v681_v48 }
  0x41   : > { %2637 = vmatprep.subr.bf16.mxu0 %v2868_v2  ;;  %v422_v22 = vpack.c.bf16 %v407_v20, %v406_v19  ;;  %v410_v25 = vld [vmem:[%s3202_s23 + $0x60] sm:$0xff]  ;;  %v411_v26 = vld [vmem:[%s3202_s23 + $0x68] sm:$0xff]  ;;  %v423_v27 = vpack.c.bf16 %v409_v24, %v408_v23  ;;  %v412_v29 = vld [vmem:[%s3202_s23 + $0x70] sm:$0xff]  ;;  %vm3274_vm2 = vcmp.eq.s32.totalorder %v962_v52, 1  ;;  %v687_v5 = vadd.s32 56, %v3252_v40  ;;  %p1004_p0 = scmp.eq.s32.totalorder %s3018_s16, 1 }
  0x42   : > { %v424_v28 = vpack.c.bf16 %v411_v26, %v410_v25  ;;  %v413_v30 = vld [vmem:[%s3202_s23 + $0x78] sm:$0xff]  ;;  %v414_v31 = vld [vmem:[%s3202_s23 + $0x80] sm:$0xff]  ;;  %v415_v32 = vld [vmem:[%s3202_s23 + $0x88] sm:$0xff]  ;;  %vm3285_vm3 = vcmp.eq.s32.totalorder %v718_v51, 0  ;;  %vm3289_vm4 = vcmp.eq.s32.totalorder %v725_v54, 15  ;;  %v746_v6 = vand.u32 15, %v686_v55 }
  0x43   : > { %v425_v33 = vpack.c.bf16 %v413_v30, %v412_v29  ;;  %v426_v34 = vpack.c.bf16 %v415_v32, %v414_v31  ;;  %v416_v35 = vld [vmem:[%s3202_s23 + $0x90] sm:$0xff]  ;;  %v417_v36 = vld [vmem:[%s3202_s23 + $0x98] sm:$0xff]  ;;  %v685_v13 = vadd.s32 40, %v3252_v40  ;;  %vm3303_vm5 = vcmp.eq.s32.totalorder %v711_v60, 15  ;;  %v2876_v32 = vld [vmem:[%s3900_s4 + $0x48] sm:$0xff]   ;;  %s3962_s11 = sld [smem:[#allocation18_spill]] }
  0x44   : > { %2638 = vmatpush3.bf16.msra.mxu0 %v2868_v2  ;;  %v427_v37 = vpack.c.bf16 %v417_v36, %v416_v35  ;;  %v3258_v41 = vld [vmem:[%s3898_s2] ss:$0 sm:$0xff]  ;;  %v2874_v62 = vld [vmem:[%s3900_s4 + $0x58] sm:$0xff]   ;;  %vm3320_vm6 = vcmp.eq.s32.totalorder %v746_v6, 0  ;;  %v691_v42 = vadd.s32 88, %v3252_v40  ;;  %v690_v2 = vadd.s32 80, %v3252_v40 }
  0x45   : > { %2639 = vmatprep.subr.bf16.mxu0 %v2869_v3  ;;  %v3264_v44 = vld [vmem:[%s3899_s3] ss:$0 sm:$0xff]  ;;  %2669 = vmatprep.subr.bf16.mxu1 %v2874_v62  ;;  %v739_v29 = vand.u32 15, %v685_v13  ;;  %s3452_s13 = scalar_select %p1004_p0, 1, 0 }
  0x46   : > { %2670 = vmatpush3.bf16.msra.mxu1 %v2874_v62  ;;  %v2878_v51 = vld [vmem:[%s3900_s4 + $0x40] sm:$0xff]   ;;  %s2464_s27 = sshll.u32 %s3198_s24, 7  ;;  %s2562_s18 = sshll.u32 %s3018_s16, 4 }
  0x47   : > { %vm3358_vm8 = vcmp.eq.s32.totalorder %v739_v29, 15  ;;  %v2879_v52 = vld [vmem:[%s3900_s4 + $0x80] sm:$0xff]   ;;  %s3778_s10 = scalar_lea.vmem [#allocation6], %s2464_s27  ;;  %s2352_s22 = scalar_lea.sflag [#allocation5], %s3198_s24 }
  0x48   : > { %2640 = vmatpush3.bf16.msra.mxu0 %v2869_v3  ;;  %v2880_v3 = vld [vmem:[%s3900_s4 + $0x38] sm:$0xff]   ;;  %s2368_s29 = sshll.u32 %s3778_s10, 4  ;;  %s3841_s29 = int_to_ptr.vmem [resolvable:$true] %s2368_s29 }
  0x49   : > { %2641 = vmatprep.subr.bf16.mxu0 %v2870_v7  ;;  %s2938_s28 = scalar_lea.vmem %s3841_s29, 2048 }
  0x4a   : > { %p2939_p2 = scmp.ne.s32.totalorder %s3841_s29, %s2938_s28 }
  0x4c   : > { %2642 = vmatpush3.bf16.msra.mxu0 %v2870_v7  ;;  %p2940_p3 = pnand %p2939_p2, %p3165_p9 }
  0x4d   : > { %2643 = vmatprep.subr.bf16.mxu0 %v2871_v8 }
  0x4e   : > { %p2941_p4 = pneg %p2940_p3 }
  0x50   : > { %2644 = vmatpush3.bf16.msra.mxu0 %v2871_v8 }
  0x51   : > { %2645 = vmatprep.subr.bf16.mxu0 %v2872_v9 }
  0x54   : > { %2646 = vmatpush3.bf16.msra.mxu0 %v2872_v9 }
  0x55   : > { %2647 = vmatprep.subr.bf16.mxu0 %v2873_v10 }
  0x58   : > { %2648 = vmatpush3.bf16.msra.mxu0 %v2873_v10 }
  0x5b   : > { %2650 = vmatmul.mubr.bf16.vlgmr.msra.gmra.mxu0 %v419_v15  ;;  %v684_v15 = vadd.s32 32, %v3252_v40 }
  0x5c   : > { %2653 = vmatprep.mubr.bf16.mxu0 %v420_v16  ;;  %v2875_v16 = vld [vmem:[%s3900_s4 + $0x50] sm:$0xff]  }
  0x5d   : > { %2671 = vmatprep.subr.bf16.mxu1 %v2875_v16  ;;  %v732_v31 = vand.u32 15, %v684_v15 }
  0x5e   : > { %2672 = vmatpush3.bf16.msra.mxu1 %v2875_v16  ;;  %v774_v16 = vand.u32 15, %v690_v2 }
  0x5f   : > { %2673 = vmatprep.subr.bf16.mxu1 %v2876_v32  ;;  %vm3362_vm9 = vcmp.eq.s32.totalorder %v732_v31, 0 }
  0x60   : > { %vm3463_vm12 = vcmp.eq.s32.totalorder %v774_v16, 0 }
  0x62   : > { %2674 = vmatpush3.bf16.msra.mxu1 %v2876_v32 }
  0x63   : > { %2654 = vmatmul.mubr.bf16.gmra.mxu0 %v421_v21  ;;  %2675 = vmatprep.subr.bf16.mxu1 %v2878_v51 }
  0x64   : > { %2657 = vmatprep.mubr.bf16.mxu0 %v422_v22  ;;  %v753_v22 = vand.u32 15, %v687_v5 }
  0x66   : > { %vm3346_vm7 = vcmp.eq.s32.totalorder %v753_v22, 15  ;;  %2676 = vmatpush3.bf16.msra.mxu1 %v2878_v51 }
  0x67   : > { %2677 = vmatprep.subr.bf16.mxu1 %v2880_v3 }
  0x6a   : > { %2678 = vmatpush3.bf16.msra.mxu1 %v2880_v3 }
  0x6b   : > { %2658 = vmatmul.mubr.bf16.gmra.mxu0 %v423_v27 }
  0x6c   : > { %2661 = vmatprep.mubr.bf16.mxu0 %v424_v28 }
  0x73   : > { %2662 = vmatmul.mubr.bf16.gmra.mxu0 %v425_v33  ;;  %v2877_v33 = vld [vmem:[%s3900_s4 + $0x88] sm:$0xff]  }
  0x74   : > { %2665 = vmatprep.mubr.bf16.mxu0 %v426_v34  ;;  %2725 = vmatprep.subr.bf16.mxu0 %v2877_v33 }
  0x75   : > { %2726 = vmatpush3.bf16.msra.mxu0 %v2877_v33 }
  0x76   : > { %2727 = vmatprep.subr.bf16.mxu0 %v2879_v52 }
  0x79   : > { %2728 = vmatpush3.bf16.msra.mxu0 %v2879_v52 }
  0x7b   : > { %2666 = vmatmul.mubr.bf16.gmra.mxu0 %v427_v37 }
 0x11b   : > { %v2651_v43 = vpop.f32.mrf.mxu0 }
 0x11c   : > { %v614_v46 = vmul.f32 %v2651_v43, %v3258_v41 }
 0x11d   : > { %v526_v47 = vpop.f32.mrf.mxu0 }
 0x11e   : > { %v641_v49 = vadd.f32 %v3264_v44, %v614_v46  ;;  %v612_v50 = vmul.f32 %v3258_v41, %v526_v47 }
 0x11f   : > { %v2652_v53 = vpop.f32.mrf.mxu0 }
 0x120   : > { %v661_v56 = vmax.f32 %v641_v49, 0.0  ;;  %v639_v57 = vadd.f32 %v3264_v44, %v612_v50  ;;  %v615_v58 = vmul.f32 %v2652_v53, %v3258_v41  ;;  %v689_v50 = vadd.s32 72, %v3252_v40 }
 0x121   : > { %v529_v59 = vpop.f32.mrf.mxu0  ;;  %v1006_v49 = vstv %s3452_s13  ;;  %s3963_s13 = sld [smem:[#allocation10_spill]] }
 0x122   : > { %1274 = vst.msk [vmem:[#allocation2 + $0x12] sm:$0xff] %vm1271_vm1, %v661_v56  ;;  %v659_v63 = vmax.f32 %v639_v57, 0.0  ;;  %v642_v0 = vadd.f32 %v3264_v44, %v615_v58  ;;  %v613_v1 = vmul.f32 %v3258_v41, %v529_v59  ;;  %1316 = vrot.lane.b32.xlu0 %v661_v56, %s3040_s26  ;;  %v1250_v12 = vsel %vm3285_vm3, 0.0, %v661_v56 }
 0x123   : > { %v2655_v4 = vpop.f32.mrf.mxu0  ;;  %v781_v58 = vand.u32 15, %v691_v42  ;;  %vm3505_vm15 = vcmp.eq.s32.totalorder %v1006_v49, 1 }
 0x124   : > { %v662_v7 = vmax.f32 %v642_v0, 0.0  ;;  %v640_v8 = vadd.f32 %v3264_v44, %v613_v1  ;;  %v618_v9 = vmul.f32 %v2655_v4, %v3258_v41  ;;  %v3298_v10 = vsel %vm3274_vm2, 0.0, %v659_v63  ;;  %v2881_v4 = vld [vmem:[%s3900_s4 + $0x78] sm:$0xff]  }
 0x125   : > { %v542_v11 = vpop.f32.mrf.mxu0  ;;  %1272 = vst.msk [vmem:[#allocation2 + $0x2] sm:$0xff] %vm1271_vm1, %v3298_v10  ;;  %v767_v1 = vand.u32 15, %v689_v50  ;;  %vm3408_vm10 = vcmp.eq.s32.totalorder %v781_v58, 15  ;;  %2729 = vmatprep.subr.bf16.mxu0 %v2881_v4 }
 0x126   : > { %v1171_v17 = vsel %vm3289_vm4, 0.0, %v662_v7  ;;  %v660_v18 = vmax.f32 %v640_v8, 0.0  ;;  %v645_v19 = vadd.f32 %v3264_v44, %v618_v9  ;;  %v616_v20 = vmul.f32 %v3258_v41, %v542_v11  ;;  %1417 = vrot.lane.b32.xlu0 %v1250_v12, %s3041_s25  ;;  %1318 = vrot.lane.b32.xlu1 %v662_v7, %s3040_s26 }
 0x127   : > { %1275 = vst.msk [vmem:[#allocation2 + $0x1a] sm:$0xff] %vm1271_vm1, %v1171_v17  ;;  %v2656_v21 = vpop.f32.mrf.mxu0  ;;  %v695_v11 = vadd.s32 120, %v3252_v40  ;;  %2730 = vmatpush3.bf16.msra.mxu0 %v2881_v4  ;;  %vm3420_vm11 = vcmp.eq.s32.totalorder %v767_v1, 15  ;;  %v694_v4 = vadd.s32 112, %v3252_v40  ;;  %s2558_s19 = sshll.u32 %s3963_s13, 5 }
 0x128   : > { %v665_v24 = vmax.f32 %v645_v19, 0.0  ;;  %v643_v25 = vadd.f32 %v3264_v44, %v616_v20  ;;  %v619_v26 = vmul.f32 %v2656_v21, %v3258_v41  ;;  %v3328_v27 = vsel %vm3274_vm2, 0.0, %v660_v18  ;;  %v2882_v19 = vld [vmem:[%s3900_s4 + $0x30] sm:$0xff]   ;;  %s2365_s9 = sadd.s32 %s2562_s18, %s2558_s19 }
 0x129   : > { %v545_v28 = vpop.f32.mrf.mxu0  ;;  %v1169_v30 = vsel %vm3303_vm5, 0.0, %v3328_v27  ;;  %v693_v18 = vadd.s32 104, %v3252_v40  ;;  %v2883_v20 = vld [vmem:[%s3900_s4 + $0x70] sm:$0xff]   ;;  %2679 = vmatprep.subr.bf16.mxu1 %v2882_v19  ;;  %s2559_s17 = sshll.u32 %s2365_s9, 7 }
 0x12a   : > { %1278 = vst.msk [vmem:[#allocation2 + $0x32] sm:$0xff] %vm1271_vm1, %v665_v24  ;;  %v663_v34 = vmax.f32 %v643_v25, 0.0  ;;  %v646_v35 = vadd.f32 %v3264_v44, %v619_v26  ;;  %v617_v36 = vmul.f32 %v3258_v41, %v545_v28  ;;  %1419 = vrot.lane.b32.xlu1 %v662_v7, %s3041_s25  ;;  %1314 = vrot.lane.b32.xlu0 %v3328_v27, %s3040_s26  ;;  %1273 = vst.msk [vmem:[#allocation2 + $0xa] sm:$0xff] %vm1271_vm1, %v1169_v30 }
 0x12b   : > { %v1254_v38 = vsel %vm3320_vm6, 0.0, %v665_v24  ;;  %v2659_v39 = vpop.f32.mrf.mxu0  ;;  %v809_v26 = vand.u32 15, %v695_v11  ;;  %2731 = vmatprep.subr.bf16.mxu0 %v2883_v20  ;;  %2680 = vmatpush3.bf16.msra.mxu1 %v2882_v19  ;;  %v795_v33 = vand.u32 15, %v693_v18 }
 0x12c   : > { %1276 = vst.msk [vmem:[#allocation2 + $0x22] sm:$0xff] %vm1271_vm1, %v663_v34  ;;  %v3354_v43 = vmax.f32 %v646_v35, 0.0  ;;  %v644_v45 = vadd.f32 %v3264_v44, %v617_v36  ;;  %v622_v46 = vmul.f32 %v2659_v39, %v3258_v41  ;;  %v1252_v63 = vsel %vm3362_vm9, 0.0, %v663_v34  ;;  %2732 = vmatpush3.bf16.msra.mxu0 %v2883_v20  ;;  %v2884_v35 = vld [vmem:[%s3900_s4 + $0x68] sm:$0xff]  }
 0x12d   : > { %v558_v48 = vpop.f32.mrf.mxu0  ;;  %vm3473_vm13 = vcmp.eq.s32.totalorder %v809_v26, 15  ;;  %2733 = vmatprep.subr.bf16.mxu0 %v2884_v35  ;;  %vm3488_vm14 = vcmp.eq.s32.totalorder %v795_v33, 15  ;;  %vm1372_vm9 = vcmask 523520  }
 0x12e   : > { %v1175_v53 = vsel %vm3346_vm7, 0.0, %v3354_v43  ;;  %v3376_v54 = vmax.f32 %v644_v45, 0.0  ;;  %1324 = vrot.lane.b32.xlu1 %v665_v24, %s3040_s26  ;;  %1425 = vrot.lane.b32.xlu0 %v1254_v38, %s3041_s25  ;;  %v649_v55 = vadd.f32 %v3264_v44, %v622_v46  ;;  %v620_v56 = vmul.f32 %v3258_v41, %v558_v48 }
 0x12f   : > { %1279 = vst.msk [vmem:[#allocation2 + $0x3a] sm:$0xff] %vm1271_vm1, %v1175_v53  ;;  %v2660_v57 = vpop.f32.mrf.mxu0  ;;  %v699_v45 = vadd.s32 152, %v3252_v40 }
 0x130   : > { %v1173_v59 = vsel %vm3358_vm8, 0.0, %v3376_v54  ;;  %v3386_v60 = vmax.f32 %v649_v55, 0.0  ;;  %v647_v61 = vadd.f32 %v3264_v44, %v620_v56  ;;  %v623_v62 = vmul.f32 %v2660_v57, %v3258_v41  ;;  %2734 = vmatpush3.bf16.msra.mxu0 %v2884_v35  ;;  %v2885_v56 = vld [vmem:[%s3900_s4 + $0x60] sm:$0xff]  }
 0x131   : > { %1277 = vst.msk [vmem:[#allocation2 + $0x2a] sm:$0xff] %vm1271_vm1, %v1173_v59  ;;  %v561_v0 = vpop.f32.mrf.mxu0  ;;  %v697_v55 = vadd.s32 136, %v3252_v40  ;;  %2735 = vmatprep.subr.bf16.mxu0 %v2885_v56 }
 0x132   : > { %1282 = vst.msk [vmem:[#allocation2 + $0x52] sm:$0xff] %vm1271_vm1, %v3386_v60  ;;  %v3402_v5 = vmax.f32 %v647_v61, 0.0  ;;  %1320 = vrot.lane.b32.xlu1 %v663_v34, %s3040_s26  ;;  %1421 = vrot.lane.b32.xlu0 %v1252_v63, %s3041_s25  ;;  %v650_v6 = vadd.f32 %v3264_v44, %v623_v62  ;;  %v621_v7 = vmul.f32 %v3258_v41, %v561_v0  ;;  %v688_v34 = vadd.s32 64, %v3252_v40 }
 0x133   : > { %v2663_v9 = vpop.f32.mrf.mxu0  ;;  %v1258_v50 = vsel %vm3463_vm12, 0.0, %v3386_v60  ;;  %v837_v63 = vand.u32 15, %v699_v45 }
 0x134   : > { %1280 = vst.msk [vmem:[#allocation2 + $0x42] sm:$0xff] %vm1271_vm1, %v3402_v5  ;;  %v3415_v12 = vmax.f32 %v650_v6, 0.0  ;;  %v648_v13 = vadd.f32 %v3264_v44, %v621_v7  ;;  %v626_v14 = vmul.f32 %v2663_v9, %v3258_v41  ;;  %v760_v52 = vand.u32 15, %v688_v34  ;;  %2736 = vmatpush3.bf16.msra.mxu0 %v2885_v56 }
 0x135   : > { %v574_v17 = vpop.f32.mrf.mxu0  ;;  %v823_v7 = vand.u32 15, %v697_v55  ;;  %vm1127_vm2 = vcmp.eq.s32.totalorder %v837_v63, 15 }
 0x136   : > { %v1179_v21 = vsel %vm3408_vm10, 0.0, %v3415_v12  ;;  %v3434_v22 = vmax.f32 %v648_v13, 0.0  ;;  %1326 = vrot.lane.b32.xlu1 %v3354_v43, %s3040_s26  ;;  %1322 = vrot.lane.b32.xlu0 %v3376_v54, %s3040_s26  ;;  %v653_v23 = vadd.f32 %v3264_v44, %v626_v14  ;;  %v624_v24 = vmul.f32 %v3258_v41, %v574_v17 }
 0x137   : > { %1283 = vst.msk [vmem:[#allocation2 + $0x5a] sm:$0xff] %vm1271_vm1, %v1179_v21  ;;  %v2664_v25 = vpop.f32.mrf.mxu0  ;;  %vm3514_vm0 = vcmp.eq.s32.totalorder %v760_v52, 0  ;;  %vm1125_vm3 = vcmp.eq.s32.totalorder %v823_v7, 15  ;;  %vm1473_vm10 = vcmask 785920  }
 0x138   : > { %v1177_v28 = vsel %vm3420_vm11, 0.0, %v3434_v22  ;;  %v3446_v29 = vmax.f32 %v653_v23, 0.0  ;;  %v651_v30 = vadd.f32 %v3264_v44, %v624_v24  ;;  %v627_v31 = vmul.f32 %v2664_v25, %v3258_v41 }
 0x139   : > { %1281 = vst.msk [vmem:[#allocation2 + $0x4a] sm:$0xff] %vm1271_vm1, %v1177_v28  ;;  %v577_v32 = vpop.f32.mrf.mxu0  ;;  %v1256_v16 = vsel %vm3514_vm0, 0.0, %v3402_v5  ;;  %v696_v24 = vadd.s32 128, %v3252_v40  ;;  %v698_v25 = vadd.s32 144, %v3252_v40  ;;  %vm1582_vm11 = vcmask 785408  }
 0x13a   : > { %1427 = vrot.lane.b32.xlu1 %v3354_v43, %s3041_s25  ;;  %1332 = vrot.lane.b32.xlu0 %v3386_v60, %s3040_s26  ;;  %1286 = vst.msk [vmem:[#allocation2 + $0x72] sm:$0xff] %vm1271_vm1, %v3446_v29  ;;  %v3469_v37 = vmax.f32 %v651_v30, 0.0  ;;  %v654_v38 = vadd.f32 %v3264_v44, %v627_v31  ;;  %v625_v39 = vmul.f32 %v3258_v41, %v577_v32 }
 0x13b   : > { %v2667_v43 = vpop.f32.mrf.mxu0  ;;  %v830_v26 = vand.u32 15, %v698_v25 }
 0x13c   : > { %1284 = vst.msk [vmem:[#allocation2 + $0x62] sm:$0xff] %vm1271_vm1, %v3469_v37  ;;  %v3480_v46 = vmax.f32 %v654_v38, 0.0  ;;  %v652_v47 = vadd.f32 %v3264_v44, %v625_v39  ;;  %v630_v48 = vmul.f32 %v2667_v43, %v3258_v41 }
 0x13d   : > { %v590_v53 = vpop.f32.mrf.mxu0  ;;  %vm1206_vm7 = vcmp.eq.s32.totalorder %v830_v26, 0 }
 0x13e   : > { %1423 = vrot.lane.b32.xlu1 %v3376_v54, %s3041_s25  ;;  %1433 = vrot.lane.b32.xlu0 %v1258_v50, %s3041_s25  ;;  %v1183_v57 = vsel %vm3473_vm13, 0.0, %v3480_v46  ;;  %v672_v58 = vmax.f32 %v652_v47, 0.0  ;;  %v657_v59 = vadd.f32 %v3264_v44, %v630_v48  ;;  %v628_v60 = vmul.f32 %v3258_v41, %v590_v53 }
 0x13f   : > { %1287 = vst.msk [vmem:[#allocation2 + $0x7a] sm:$0xff] %vm1271_vm1, %v1183_v57  ;;  %v2668_v61 = vpop.f32.mrf.mxu0 }
 0x140   : > { %v1181_v54 = vsel %vm3488_vm14, 0.0, %v672_v58  ;;  %v677_v0 = vmax.f32 %v657_v59, 0.0  ;;  %v655_v1 = vadd.f32 %v3264_v44, %v628_v60  ;;  %v631_v2 = vmul.f32 %v2668_v61, %v3258_v41  ;;  %v2888_v61 = vld [vmem:[%s3900_s4 + $0x18] sm:$0xff]  }
 0x141   : > { %1285 = vst.msk [vmem:[#allocation2 + $0x6a] sm:$0xff] %vm1271_vm1, %v1181_v54  ;;  %v593_v6 = vpop.f32.mrf.mxu0 }
 0x142   : > { %1328 = vrot.lane.b32.xlu0 %v3402_v5, %s3040_s26  ;;  %1334 = vrot.lane.b32.xlu1 %v3415_v12, %s3040_s26  ;;  %v675_v8 = vmax.f32 %v655_v1, 0.0  ;;  %v658_v9 = vadd.f32 %v3264_v44, %v631_v2  ;;  %v629_v11 = vmul.f32 %v3258_v41, %v593_v6  ;;  %v1106_v13 = vsel %vm3505_vm15, 0.0, %v677_v0  ;;  %v3548_v5 = vld [vmem:[%s3900_s4 + $0x28] sm:$0xff]   ;;  %v2889_v2 = vld [vmem:[%s3900_s4 + $0x10] sm:$0xff]  }
 0x143   : > { %1290 = vst.msk [vmem:[#allocation2 + $0x92] sm:$0xff] %vm1271_vm1, %v1106_v13  ;;  %v802_v41 = vand.u32 15, %v694_v4  ;;  %2697 = vmatprep.subr.bf16.mxu1 %v3548_v5  ;;  %v1266_v30 = vsel %vm1206_vm7, 0.0, %v1106_v13  ;;  %v2890_v6 = vld [vmem:[%s3900_s4 + $0x8] sm:$0xff]  }
 0x144   : > { %1288 = vst.msk [vmem:[#allocation2 + $0x82] sm:$0xff] %vm1271_vm1, %v675_v8  ;;  %v678_v14 = vmax.f32 %v658_v9, 0.0  ;;  %v656_v15 = vadd.f32 %v3264_v44, %v629_v11  ;;  %v692_v44 = vadd.s32 96, %v3252_v40 }
 0x145   : > { %vm1202_vm4 = vcmp.eq.s32.totalorder %v802_v41, 0 }
 0x146   : > { %1429 = vrot.lane.b32.xlu0 %v1256_v16, %s3041_s25  ;;  %1435 = vrot.lane.b32.xlu1 %v3415_v12, %s3041_s25  ;;  %v676_v17 = vmax.f32 %v656_v15, 0.0  ;;  %v1107_v18 = vsel %vm3505_vm15, 0.0, %v678_v14  ;;  %v1262_v12 = vsel %vm1202_vm4, 0.0, %v3446_v29  ;;  %v788_v21 = vand.u32 15, %v692_v44  ;;  %v2891_v14 = vld [vmem:[%s3900_s4] sm:$0xff]  }
 0x147   : > { %v1187_v19 = vsel %vm1127_vm2, 0.0, %v1107_v18 }
 0x148   : > { %v1185_v20 = vsel %vm1125_vm3, 0.0, %v676_v17  ;;  %1291 = vst.msk [vmem:[#allocation2 + $0x9a] sm:$0xff] %vm1271_vm1, %v1187_v19  ;;  %vm1200_vm5 = vcmp.eq.s32.totalorder %v788_v21, 0 }
 0x149   : > { %1289 = vst.msk [vmem:[#allocation2 + $0x8a] sm:$0xff] %vm1271_vm1, %v1185_v20  ;;  %v1260_v23 = vsel %vm1200_vm5, 0.0, %v3469_v37 }
 0x14a   : > { %1330 = vrot.lane.b32.xlu1 %v3434_v22, %s3040_s26  ;;  %1340 = vrot.lane.b32.xlu0 %v3446_v29, %s3040_s26  ;;  %v704_v29 = vand.u32 15, %v3252_v40 }
 0x14c   : > { %vm1188_vm8 = vcmp.eq.s32.totalorder %v704_v29, 0 }
 0x14d   : > { %v1248_v31 = vsel %vm1188_vm8, 0.0, %v3298_v10 }
 0x14e   : > { %1431 = vrot.lane.b32.xlu1 %v3434_v22, %s3041_s25  ;;  %1441 = vrot.lane.b32.xlu0 %v1262_v12, %s3041_s25  ;;  %v816_v22 = vand.u32 15, %v696_v24 }
 0x150   : > { %vm1204_vm6 = vcmp.eq.s32.totalorder %v816_v22, 0 }
 0x151   : > { %v1264_v28 = vsel %vm1204_vm6, 0.0, %v675_v8 }
 0x152   : > { %1336 = vrot.lane.b32.xlu0 %v3469_v37, %s3040_s26  ;;  %1342 = vrot.lane.b32.xlu1 %v3480_v46, %s3040_s26 }
 0x156   : > { %1437 = vrot.lane.b32.xlu0 %v1260_v23, %s3041_s25  ;;  %1443 = vrot.lane.b32.xlu1 %v3480_v46, %s3041_s25 }
 0x15a   : > { %1338 = vrot.lane.b32.xlu1 %v672_v58, %s3040_s26  ;;  %1348 = vrot.lane.b32.xlu0 %v1106_v13, %s3040_s26 }
 0x15e   : > { %1439 = vrot.lane.b32.xlu1 %v672_v58, %s3041_s25  ;;  %1344 = vrot.lane.b32.xlu0 %v675_v8, %s3040_s26  ;;  %v2887_v58 = vld [vmem:[%s3900_s4 + $0x20] sm:$0xff]  }
 0x162   : > { %1445 = vrot.lane.b32.xlu0 %v1264_v28, %s3041_s25  ;;  %1346 = vrot.lane.b32.xlu1 %v676_v17, %s3040_s26 }
 0x166   : > { %1449 = vrot.lane.b32.xlu0 %v1266_v30, %s3041_s25  ;;  %1447 = vrot.lane.b32.xlu1 %v676_v17, %s3041_s25 }
 0x16a   : > { %1413 = vrot.lane.b32.xlu0 %v1248_v31, %s3041_s25  ;;  %1312 = vrot.lane.b32.xlu1 %v3298_v10, %s3040_s26 }
 0x16e   : > { %1350 = vrot.lane.b32.xlu0 %v1107_v18, %s3040_s26  ;;  %1415 = vrot.lane.b32.xlu1 %v3328_v27, %s3041_s25 }
 0x172   : > { %1451 = vrot.lane.b32.xlu1 %v1107_v18, %s3041_s25  ;;  %s3965_s25 = sld [smem:[#allocation19_spill]] }
 0x178   : > { %s3839_s21 = scalar_lea.hbm %s3965_s25, %s2559_s17 }
 0x194   : > { %v1317_v40 = vpop.permute.xlu0 %1316 }
 0x195   : > { %1375 = vst.msk [vmem:[#allocation2 + $0x11] sm:$0xff] %vm1372_vm9, %v1317_v40 }
 0x198   : > { %v1418_v32 = vpop.permute.xlu0 %1417  ;;  %v1319_v33 = vpop.permute.xlu1 %1318 }
 0x199   : > { %1376 = vst.msk [vmem:[#allocation2 + $0x19] sm:$0xff] %vm1372_vm9, %v1319_v33 }
 0x19c   : > { %v1420_v34 = vpop.permute.xlu1 %1419  ;;  %v1315_v35 = vpop.permute.xlu0 %1314 }
 0x19d   : > { %1477 = vst.msk [vmem:[#allocation2 + $0x18] sm:$0xff] %vm1473_vm10, %v1420_v34 }
 0x19e   : > { %1374 = vst.msk [vmem:[#allocation2 + $0x9] sm:$0xff] %vm1372_vm9, %v1315_v35 }
 0x19f   : > { %1476 = vst.msk [vmem:[#allocation2 + $0x10] sm:$0xff] %vm1473_vm10, %v1418_v32 }
 0x1a0   : > { %v1325_v10 = vpop.permute.xlu1 %1324  ;;  %v1426_v27 = vpop.permute.xlu0 %1425 }
 0x1a1   : > { %1379 = vst.msk [vmem:[#allocation2 + $0x31] sm:$0xff] %vm1372_vm9, %v1325_v10 }
 0x1a4   : > { %v1321_v36 = vpop.permute.xlu1 %1320  ;;  %v1422_v37 = vpop.permute.xlu0 %1421 }
 0x1a5   : > { %1377 = vst.msk [vmem:[#allocation2 + $0x21] sm:$0xff] %vm1372_vm9, %v1321_v36 }
 0x1a6   : > { %1478 = vst.msk [vmem:[#allocation2 + $0x20] sm:$0xff] %vm1473_vm10, %v1422_v37  ;;  %v1496_v45 = vld [vmem:[#allocation2 + $0x11] sm:$0xff] }
 0x1a8   : > { %v1327_v38 = vpop.permute.xlu1 %1326  ;;  %v1323_v39 = vpop.permute.xlu0 %1322 }
 0x1a9   : > { %1380 = vst.msk [vmem:[#allocation2 + $0x39] sm:$0xff] %vm1372_vm9, %v1327_v38  ;;  %1378 = vst.msk [vmem:[#allocation2 + $0x29] sm:$0xff] %vm1372_vm9, %v1323_v39 }
 0x1aa   : > { %1480 = vst.msk [vmem:[#allocation2 + $0x30] sm:$0xff] %vm1473_vm10, %v1426_v27 }
 0x1ac   : > { %v1428_v42 = vpop.permute.xlu1 %1427  ;;  %v1333_v43 = vpop.permute.xlu0 %1332 }
 0x1ad   : > { %1481 = vst.msk [vmem:[#allocation2 + $0x38] sm:$0xff] %vm1473_vm10, %v1428_v42  ;;  %v1497_v46 = vld [vmem:[#allocation2 + $0x19] sm:$0xff]  ;;  %v2892_v42 = vld [vmem:[%s3903_s7 + $0x8] sm:$0xff]  }
 0x1ae   : > { %1383 = vst.msk [vmem:[#allocation2 + $0x51] sm:$0xff] %vm1372_vm9, %v1333_v43  ;;  %v3595_v47 = vpack.c.bf16 %v1497_v46, %v1496_v45  ;;  %2753 = vmatprep.subr.bf16.mxu0 %v2892_v42  ;;  %v2893_v43 = vld [vmem:[%s3903_s7] sm:$0xff]  }
 0x1b0   : > { %2681 = vmatprep.mubr.msk.bf16.mxu1 %vm1582_vm11, %v3595_v47  ;;  %v1424_v48 = vpop.permute.xlu1 %1423  ;;  %v1434_v49 = vpop.permute.xlu0 %1433 }
 0x1b1   : > { %1479 = vst.msk [vmem:[#allocation2 + $0x28] sm:$0xff] %vm1473_vm10, %v1424_v48 }
 0x1b4   : > { %v1329_v50 = vpop.permute.xlu0 %1328  ;;  %v1335_v51 = vpop.permute.xlu1 %1334  ;;  %v1500_v54 = vld [vmem:[#allocation2 + $0x31] sm:$0xff] }
 0x1b5   : > { %1381 = vst.msk [vmem:[#allocation2 + $0x41] sm:$0xff] %vm1372_vm9, %v1329_v50  ;;  %1384 = vst.msk [vmem:[#allocation2 + $0x59] sm:$0xff] %vm1372_vm9, %v1335_v51 }
 0x1b8   : > { %v1430_v52 = vpop.permute.xlu0 %1429  ;;  %v1436_v53 = vpop.permute.xlu1 %1435  ;;  %v1498_v55 = vld [vmem:[#allocation2 + $0x21] sm:$0xff]  ;;  %v1499_v56 = vld [vmem:[#allocation2 + $0x29] sm:$0xff] }
 0x1b9   : > { %1482 = vst.msk [vmem:[#allocation2 + $0x40] sm:$0xff] %vm1473_vm10, %v1430_v52  ;;  %1485 = vst.msk [vmem:[#allocation2 + $0x58] sm:$0xff] %vm1473_vm10, %v1436_v53  ;;  %v3604_v57 = vpack.c.bf16 %v1499_v56, %v1498_v55 }
 0x1bb   : > { %2682 = vmatmul.mubr.msk.bf16.vlgmr.msra.gmra.mxu1 %vm1582_vm11, %v3604_v57  ;;  %2737 = vmatprep.mubr.msk.bf16.mxu0 %vm1582_vm11, %v3604_v57 }
 0x1bc   : > { %v1331_v59 = vpop.permute.xlu1 %1330  ;;  %v1341_v60 = vpop.permute.xlu0 %1340  ;;  %2698 = vmatpush3.bf16.msra.mxu1 %v3548_v5 }
 0x1bd   : > { %1382 = vst.msk [vmem:[#allocation2 + $0x49] sm:$0xff] %vm1372_vm9, %v1331_v59  ;;  %1387 = vst.msk [vmem:[#allocation2 + $0x71] sm:$0xff] %vm1372_vm9, %v1341_v60  ;;  %2699 = vmatprep.subr.bf16.mxu1 %v2887_v58 }
 0x1be   : > { %1484 = vst.msk [vmem:[#allocation2 + $0x50] sm:$0xff] %vm1473_vm10, %v1434_v49 }
 0x1c0   : > { %v1432_v62 = vpop.permute.xlu1 %1431  ;;  %v1442_v63 = vpop.permute.xlu0 %1441  ;;  %v1501_v0 = vld [vmem:[#allocation2 + $0x39] sm:$0xff]  ;;  %2700 = vmatpush3.bf16.msra.mxu1 %v2887_v58 }
 0x1c1   : > { %1483 = vst.msk [vmem:[#allocation2 + $0x48] sm:$0xff] %vm1473_vm10, %v1432_v62  ;;  %v3621_v1 = vpack.c.bf16 %v1501_v0, %v1500_v54  ;;  %2701 = vmatprep.subr.bf16.mxu1 %v2888_v61 }
 0x1c3   : > { %2685 = vmatprep.mubr.msk.bf16.mxu1 %vm1582_vm11, %v3621_v1  ;;  %2738 = vmatmul.mubr.msk.bf16.vlgmr.msra.gmra.mxu0 %vm1582_vm11, %v3621_v1 }
 0x1c4   : > { %v1337_v3 = vpop.permute.xlu0 %1336  ;;  %v1343_v4 = vpop.permute.xlu1 %1342  ;;  %2702 = vmatpush3.bf16.msra.mxu1 %v2888_v61  ;;  %2754 = vmatpush3.bf16.msra.mxu0 %v2892_v42 }
 0x1c5   : > { %1385 = vst.msk [vmem:[#allocation2 + $0x61] sm:$0xff] %vm1372_vm9, %v1337_v3  ;;  %1388 = vst.msk [vmem:[#allocation2 + $0x79] sm:$0xff] %vm1372_vm9, %v1343_v4  ;;  %2703 = vmatprep.subr.bf16.mxu1 %v2889_v2  ;;  %v1504_v18 = vld [vmem:[#allocation2 + $0x51] sm:$0xff]  ;;  %2755 = vmatprep.subr.bf16.mxu0 %v2893_v43 }
 0x1c8   : > { %v1438_v7 = vpop.permute.xlu0 %1437  ;;  %v1444_v8 = vpop.permute.xlu1 %1443  ;;  %v1502_v9 = vld [vmem:[#allocation2 + $0x41] sm:$0xff]  ;;  %v1503_v11 = vld [vmem:[#allocation2 + $0x49] sm:$0xff]  ;;  %2704 = vmatpush3.bf16.msra.mxu1 %v2889_v2  ;;  %2756 = vmatpush3.bf16.msra.mxu0 %v2893_v43 }
 0x1c9   : > { %1486 = vst.msk [vmem:[#allocation2 + $0x60] sm:$0xff] %vm1473_vm10, %v1438_v7  ;;  %1489 = vst.msk [vmem:[#allocation2 + $0x78] sm:$0xff] %vm1473_vm10, %v1444_v8  ;;  %v3637_v13 = vpack.c.bf16 %v1503_v11, %v1502_v9  ;;  %2705 = vmatprep.subr.bf16.mxu1 %v2890_v6 }
 0x1cb   : > { %2686 = vmatmul.mubr.msk.bf16.gmra.mxu1 %vm1582_vm11, %v3637_v13  ;;  %2741 = vmatprep.mubr.msk.bf16.mxu0 %vm1582_vm11, %v3637_v13 }
 0x1cc   : > { %v1339_v15 = vpop.permute.xlu1 %1338  ;;  %v1349_v16 = vpop.permute.xlu0 %1348  ;;  %2706 = vmatpush3.bf16.msra.mxu1 %v2890_v6 }
 0x1cd   : > { %1386 = vst.msk [vmem:[#allocation2 + $0x69] sm:$0xff] %vm1372_vm9, %v1339_v15  ;;  %1391 = vst.msk [vmem:[#allocation2 + $0x91] sm:$0xff] %vm1372_vm9, %v1349_v16  ;;  %2707 = vmatprep.subr.bf16.mxu1 %v2891_v14 }
 0x1ce   : > { %1488 = vst.msk [vmem:[#allocation2 + $0x70] sm:$0xff] %vm1473_vm10, %v1442_v63 }
 0x1d0   : > { %v1440_v41 = vpop.permute.xlu1 %1439  ;;  %v1345_v17 = vpop.permute.xlu0 %1344  ;;  %v1505_v19 = vld [vmem:[#allocation2 + $0x59] sm:$0xff]  ;;  %2708 = vmatpush3.bf16.msra.mxu1 %v2891_v14 }
 0x1d1   : > { %1487 = vst.msk [vmem:[#allocation2 + $0x68] sm:$0xff] %vm1473_vm10, %v1440_v41  ;;  %v1515_v20 = vpack.c.bf16 %v1505_v19, %v1504_v18  ;;  %2773 = vmatprep.subr.bf16.mxu1 %v2892_v42  ;;  %v3704_v14 = vld [vmem:[%s3901_s5] ss:$0 sm:$0xff] }
 0x1d2   : > { %1389 = vst.msk [vmem:[#allocation2 + $0x81] sm:$0xff] %vm1372_vm9, %v1345_v17 }
 0x1d3   : > { %2689 = vmatprep.mubr.msk.bf16.mxu1 %vm1582_vm11, %v1515_v20  ;;  %2742 = vmatmul.mubr.msk.bf16.gmra.mxu0 %vm1582_vm11, %v1515_v20 }
 0x1d4   : > { %v1446_v44 = vpop.permute.xlu0 %1445  ;;  %v1347_v5 = vpop.permute.xlu1 %1346 }
 0x1d5   : > { %1490 = vst.msk [vmem:[#allocation2 + $0x80] sm:$0xff] %vm1473_vm10, %v1446_v44  ;;  %v1508_v28 = vld [vmem:[#allocation2 + $0x71] sm:$0xff] }
 0x1d6   : > { %1390 = vst.msk [vmem:[#allocation2 + $0x89] sm:$0xff] %vm1372_vm9, %v1347_v5 }
 0x1d8   : > { %v1450_v12 = vpop.permute.xlu0 %1449  ;;  %v1448_v21 = vpop.permute.xlu1 %1447  ;;  %v1506_v23 = vld [vmem:[#allocation2 + $0x61] sm:$0xff]  ;;  %v1507_v24 = vld [vmem:[#allocation2 + $0x69] sm:$0xff] }
 0x1d9   : > { %1492 = vst.msk [vmem:[#allocation2 + $0x90] sm:$0xff] %vm1473_vm10, %v1450_v12  ;;  %1491 = vst.msk [vmem:[#allocation2 + $0x88] sm:$0xff] %vm1473_vm10, %v1448_v21  ;;  %v1516_v22 = vpack.c.bf16 %v1507_v24, %v1506_v23  ;;  %v3711_v12 = vld [vmem:[%s3902_s6] ss:$0 sm:$0xff] }
 0x1db   : > { %2690 = vmatmul.mubr.msk.bf16.gmra.mxu1 %vm1582_vm11, %v1516_v22  ;;  %2745 = vmatprep.mubr.msk.bf16.mxu0 %vm1582_vm11, %v1516_v22 }
 0x1dc   : > { %v1414_v25 = vpop.permute.xlu0 %1413  ;;  %v1313_v26 = vpop.permute.xlu1 %1312  ;;  %v1509_v29 = vld [vmem:[#allocation2 + $0x79] sm:$0xff] }
 0x1dd   : > { %1373 = vst.msk [vmem:[#allocation2 + $0x1] sm:$0xff] %vm1372_vm9, %v1313_v26  ;;  %v1517_v30 = vpack.c.bf16 %v1509_v29, %v1508_v28 }
 0x1de   : > { %1474 = vst.msk [vmem:[#allocation2] sm:$0xff] %vm1473_vm10, %v1414_v25 }
 0x1df   : > { %2693 = vmatprep.mubr.msk.bf16.mxu1 %vm1582_vm11, %v1517_v30  ;;  %2746 = vmatmul.mubr.msk.bf16.gmra.mxu0 %vm1582_vm11, %v1517_v30 }
 0x1e0   : > { %v1351_v31 = vpop.permute.xlu0 %1350  ;;  %v1416_v40 = vpop.permute.xlu1 %1415  ;;  %v1530_v32 = vld [vmem:[#allocation2 + $0x81] sm:$0xff]  ;;  %v1531_v33 = vld [vmem:[#allocation2 + $0x89] sm:$0xff] }
 0x1e1   : > { %1392 = vst.msk [vmem:[#allocation2 + $0x99] sm:$0xff] %vm1372_vm9, %v1351_v31  ;;  %v1532_v34 = vpack.c.bf16 %v1531_v33, %v1530_v32 }
 0x1e2   : > { %1475 = vst.msk [vmem:[#allocation2 + $0x8] sm:$0xff] %vm1473_vm10, %v1416_v40 }
 0x1e3   : > { %2694 = vmatmul.mubr.msk.bf16.gmra.mxu1 %vm1582_vm11, %v1532_v34  ;;  %2749 = vmatprep.mubr.msk.bf16.mxu0 %vm1582_vm11, %v1532_v34 }
 0x1e4   : > { %v1452_v35 = vpop.permute.xlu1 %1451 }
 0x1e5   : > { %1493 = vst.msk [vmem:[#allocation2 + $0x98] sm:$0xff] %vm1473_vm10, %v1452_v35 }
 0x1e9   : > { %v1494_v10 = vld [vmem:[#allocation2 + $0x1] sm:$0xff]  ;;  %v1495_v27 = vld [vmem:[#allocation2 + $0x9] sm:$0xff] }
 0x1ea   : > { %v1510_v36 = vpack.c.bf16 %v1495_v27, %v1494_v10 }
 0x1ec   : > { %2709 = vmatprep.mubr.msk.bf16.mxu1 %vm1582_vm11, %v1510_v36  ;;  %v1854_v37 = vld [vmem:[#allocation2 + $0x91] sm:$0xff]  ;;  %v1855_v38 = vld [vmem:[#allocation2 + $0x99] sm:$0xff] }
 0x1ed   : > { %2710 = vmatmul.mubr.msk.bf16.vlgmr.msra.gmra.mxu1 %vm1582_vm11, %v3595_v47  ;;  %v1863_v39 = vpack.c.bf16 %v1855_v38, %v1854_v37 }
 0x1ee   : > { %2713 = vmatprep.mubr.msk.bf16.mxu1 %vm1582_vm11, %v3604_v57  ;;  %2775 = vmatpush3.bf16.msra.mxu1 %v2892_v42 }
 0x1ef   : > { %2750 = vmatmul.mubr.msk.bf16.gmra.mxu0 %vm1582_vm11, %v1863_v39  ;;  %2774 = vmatprep.subr.bf16.mxu1 %v2893_v43 }
 0x1f2   : > { %2776 = vmatpush3.bf16.msra.mxu1 %v2893_v43 }
 0x1f5   : > { %2714 = vmatmul.mubr.msk.bf16.gmra.mxu1 %vm1582_vm11, %v3621_v1 }
 0x1f6   : > { %2717 = vmatprep.mubr.msk.bf16.mxu1 %vm1582_vm11, %v3637_v13 }
 0x1fd   : > { %2718 = vmatmul.mubr.msk.bf16.gmra.mxu1 %vm1582_vm11, %v1515_v20 }
 0x1fe   : > { %2721 = vmatprep.mubr.msk.bf16.mxu1 %vm1582_vm11, %v1516_v22 }
 0x205   : > { %2722 = vmatmul.mubr.msk.bf16.gmra.mxu1 %vm1582_vm11, %v1517_v30 }
 0x27b   : > { %v2683_v45 = vpop.f32.mrf.mxu1 }
 0x27d   : > { %v1641_v46 = vpop.f32.mrf.mxu1 }
 0x27f   : > { %v2684_v47 = vpop.f32.mrf.mxu1 }
 0x281   : > { %v1644_v48 = vpop.f32.mrf.mxu1 }
 0x283   : > { %v2739_v52 = vpop.f32.mrf.mxu0 }
 0x285   : > { %v1971_v55 = vpop.f32.mrf.mxu0 }
 0x287   : > { %v2740_v58 = vpop.f32.mrf.mxu0 }
 0x289   : > { %v1974_v61 = vpop.f32.mrf.mxu0 }
 0x28b   : > { %v2687_v49 = vpop.f32.mrf.mxu1 }
 0x28d   : > { %v1657_v50 = vpop.f32.mrf.mxu1 }
 0x28f   : > { %v2688_v51 = vpop.f32.mrf.mxu1 }
 0x291   : > { %v1660_v53 = vpop.f32.mrf.mxu1 }
 0x293   : > { %v2743_v63 = vpop.f32.mrf.mxu0 }
 0x295   : > { %v1987_v1 = vpop.f32.mrf.mxu0 }
 0x297   : > { %v2744_v3 = vpop.f32.mrf.mxu0 }
 0x299   : > { %v1990_v9 = vpop.f32.mrf.mxu0 }
 0x29b   : > { %v2691_v56 = vpop.f32.mrf.mxu1 }
 0x29d   : > { %v3687_v57 = vpop.f32.mrf.mxu1 }
 0x29f   : > { %v3689_v59 = vpop.f32.mrf.mxu1  ;;  %v2747_v41 = vpop.f32.mrf.mxu0 }
 0x2a1   : > { %v3691_v60 = vpop.f32.mrf.mxu1  ;;  %v2003_v24 = vpop.f32.mrf.mxu0 }
 0x2a3   : > { %v3693_v62 = vpop.f32.mrf.mxu1  ;;  %v2748_v10 = vpop.f32.mrf.mxu0 }
 0x2a5   : > { %v3695_v54 = vpop.f32.mrf.mxu1 }
 0x2a7   : > { %v3697_v0 = vpop.f32.mrf.mxu1 }
 0x2a9   : > { %v3699_v2 = vpop.f32.mrf.mxu1 }
 0x2ad   : > { %v2711_v4 = vpop.f32.mrf.mxu1 }
 0x2ae   : > { %v1786_v6 = vadd.f32 %v2711_v4, %v2683_v45 }
 0x2af   : > { %v1777_v7 = vpop.f32.mrf.mxu1 }
 0x2b0   : > { %v1778_v8 = vadd.f32 %v1777_v7, %v1641_v46  ;;  %v2036_v11 = vadd.f32 %v2739_v52, %v1786_v6  ;;  %v2006_v52 = vpop.f32.mrf.mxu0 }
 0x2b1   : > { %v2712_v13 = vpop.f32.mrf.mxu1 }
 0x2b2   : > { %v2034_v15 = vadd.f32 %v1971_v55, %v1778_v8  ;;  %v1789_v16 = vadd.f32 %v2712_v13, %v2684_v47  ;;  %v2059_v44 = vmul.f32 %v3704_v14, %v2036_v11 }
 0x2b3   : > { %v1780_v17 = vpop.f32.mrf.mxu1 }
 0x2b4   : > { %v2057_v18 = vmul.f32 %v3704_v14, %v2034_v15  ;;  %v2037_v19 = vadd.f32 %v2740_v58, %v1789_v16  ;;  %v1781_v20 = vadd.f32 %v1780_v17, %v1644_v48  ;;  %v2082_v31 = vadd.f32 %v3711_v12, %v2059_v44 }
 0x2b5   : > { %v2715_v5 = vpop.f32.mrf.mxu1 }
 0x2b6   : > { %v2060_v21 = vmul.f32 %v3704_v14, %v2037_v19  ;;  %v2035_v23 = vadd.f32 %v1974_v61, %v1781_v20  ;;  %v1802_v22 = vadd.f32 %v2715_v5, %v2687_v49  ;;  %v2080_v26 = vadd.f32 %v3711_v12, %v2057_v18 }
 0x2b7   : > { %v1793_v25 = vpop.f32.mrf.mxu1  ;;  %v2098_v42 = vmax.f32 %v2082_v31, 0.0 }
 0x2b8   : > { %v2083_v28 = vadd.f32 %v3711_v12, %v2060_v21  ;;  %v2058_v29 = vmul.f32 %v3704_v14, %v2035_v23  ;;  %v1794_v30 = vadd.f32 %v1793_v25, %v1657_v50  ;;  %v2040_v33 = vadd.f32 %v2743_v63, %v1802_v22 }
 0x2b9   : > { %v2716_v40 = vpop.f32.mrf.mxu1  ;;  %v2096_v37 = vmax.f32 %v2080_v26, 0.0 }
 0x2ba   : > { %v2081_v32 = vadd.f32 %v3711_v12, %v2058_v29  ;;  %v2038_v34 = vadd.f32 %v1987_v1, %v1794_v30  ;;  %v1805_v35 = vadd.f32 %v2716_v40, %v2688_v51  ;;  %v2099_v27 = vmax.f32 %v2083_v28, 0.0  ;;  %v2751_v1 = vpop.f32.mrf.mxu0 }
 0x2bb   : > { %v1796_v36 = vpop.f32.mrf.mxu1  ;;  %v2063_v47 = vmul.f32 %v3704_v14, %v2040_v33 }
 0x2bc   : > { %v2097_v38 = vmax.f32 %v2081_v32, 0.0  ;;  %v2041_v39 = vadd.f32 %v2744_v3, %v1805_v35  ;;  %v2061_v43 = vmul.f32 %v3704_v14, %v2038_v34  ;;  %v1797_v45 = vadd.f32 %v1796_v36, %v1660_v53  ;;  %v2019_v15 = vpop.f32.mrf.mxu0 }
 0x2bd   : > { %v2719_v46 = vpop.f32.mrf.mxu1  ;;  %v2113_v55 = vpack.c.bf16 %v2099_v27, %v2098_v42 }
 0x2be   : > { %v2064_v48 = vmul.f32 %v3704_v14, %v2041_v39  ;;  %v1818_v49 = vadd.f32 %v2719_v46, %v2691_v56  ;;  %v2112_v50 = vpack.c.bf16 %v2097_v38, %v2096_v37  ;;  %v2039_v51 = vadd.f32 %v1990_v9, %v1797_v45  ;;  %v2752_v28 = vpop.f32.mrf.mxu0 }
 0x2bf   : > { %v1809_v58 = vpop.f32.mrf.mxu1  ;;  %v2084_v53 = vadd.f32 %v3711_v12, %v2061_v43  ;;  %v2086_v56 = vadd.f32 %v3711_v12, %v2063_v47 }
 0x2c0   : > { %v2087_v61 = vadd.f32 %v3711_v12, %v2064_v48  ;;  %v1810_v63 = vadd.f32 %v1809_v58, %v3687_v57  ;;  %2757 = vmatprep.mubr.msk.bf16.mxu0 %vm1271_vm1, %v2112_v50  ;;  %v2062_v3 = vmul.f32 %v3704_v14, %v2039_v51  ;;  %v2044_v6 = vadd.f32 %v2747_v41, %v1818_v49  ;;  %v2022_v36 = vpop.f32.mrf.mxu0 }
 0x2c1   : > { %v2720_v4 = vpop.f32.mrf.mxu1  ;;  %2758 = vmatmul.mubr.msk.bf16.vlgmr.msra.gmra.mxu0 %vm1271_vm1, %v2113_v55  ;;  %v2100_v16 = vmax.f32 %v2084_v53, 0.0  ;;  %v2102_v44 = vmax.f32 %v2086_v56, 0.0 }
 0x2c2   : > { %v2042_v7 = vadd.f32 %v2003_v24, %v1810_v63  ;;  %v1821_v8 = vadd.f32 %v2720_v4, %v3689_v59  ;;  %v2085_v9 = vadd.f32 %v3711_v12, %v2062_v3  ;;  %v2103_v57 = vmax.f32 %v2087_v61, 0.0 }
 0x2c3   : > { %v1812_v11 = vpop.f32.mrf.mxu1  ;;  %v2067_v5 = vmul.f32 %v3704_v14, %v2044_v6 }
 0x2c4   : > { %v2045_v13 = vadd.f32 %v2748_v10, %v1821_v8  ;;  %v2101_v17 = vmax.f32 %v2085_v9, 0.0  ;;  %v2065_v18 = vmul.f32 %v3704_v14, %v2042_v7  ;;  %v1813_v19 = vadd.f32 %v1812_v11, %v3691_v60  ;;  %v2894_v7 = vld [vmem:[%s3202_s23 + $0x20] sm:$0xff] }
 0x2c5   : > { %v2723_v20 = vpop.f32.mrf.mxu1  ;;  %v2115_v22 = vpack.c.bf16 %v2103_v57, %v2102_v44  ;;  %v2090_v31 = vadd.f32 %v3711_v12, %v2067_v5 }
 0x2c6   : > { %v2068_v41 = vmul.f32 %v3704_v14, %v2045_v13  ;;  %v1834_v59 = vadd.f32 %v2723_v20, %v3693_v62  ;;  %v2043_v21 = vadd.f32 %v2006_v52, %v1813_v19  ;;  %v2114_v24 = vpack.c.bf16 %v2101_v17, %v2100_v16  ;;  %v2896_v20 = vld [vmem:[%s3202_s23 + $0x28] sm:$0xff] }
 0x2c7   : > { %v1825_v23 = vpop.f32.mrf.mxu1  ;;  %v2088_v29 = vadd.f32 %v3711_v12, %v2065_v18  ;;  %v2106_v39 = vmax.f32 %v2090_v31, 0.0 }
 0x2c8   : > { %v2091_v25 = vadd.f32 %v3711_v12, %v2068_v41  ;;  %v1826_v26 = vadd.f32 %v1825_v23, %v3695_v54  ;;  %v2066_v60 = vmul.f32 %v3704_v14, %v2043_v21  ;;  %2761 = vmatprep.mubr.msk.bf16.mxu1 %vm1271_vm1, %v2114_v24  ;;  %v2048_v40 = vadd.f32 %v2751_v1, %v1834_v59  ;;  %v3766_v1 = vld [vmem:[%s3962_s11] ss:$0 sm:$0xff] }
 0x2c9   : > { %v2724_v30 = vpop.f32.mrf.mxu1  ;;  %2762 = vmatmul.mubr.msk.bf16.vlgmr.msra.gmra.mxu1 %vm1271_vm1, %v2115_v22  ;;  %v2104_v37 = vmax.f32 %v2088_v29, 0.0  ;;  %v2897_v23 = vld [vmem:[%s3202_s23 + $0x18] sm:$0xff] }
 0x2ca   : > { %v2046_v62 = vadd.f32 %v2019_v15, %v1826_v26  ;;  %v1837_v32 = vadd.f32 %v2724_v30, %v3697_v0  ;;  %v2089_v33 = vadd.f32 %v3711_v12, %v2066_v60  ;;  %v2107_v54 = vmax.f32 %v2091_v25, 0.0  ;;  %v2895_v15 = vld [vmem:[%s3202_s23 + $0x10] sm:$0xff]  ;;  %v2898_v60 = vld [vmem:[%s3202_s23 + $0x40] sm:$0xff] }
 0x2cb   : > { %v1828_v34 = vpop.f32.mrf.mxu1  ;;  %v2071_v42 = vmul.f32 %v3704_v14, %v2048_v40 }
 0x2cc   : > { %v2069_v35 = vmul.f32 %v3704_v14, %v2046_v62  ;;  %v2049_v10 = vadd.f32 %v2752_v28, %v1837_v32  ;;  %v1829_v27 = vadd.f32 %v1828_v34, %v3699_v2  ;;  %v2105_v38 = vmax.f32 %v2089_v33, 0.0  ;;  %v2899_v33 = vld [vmem:[%s3202_s23 + $0x30] sm:$0xff] }
 0x2cd   : > { %v2117_v49 = vpack.c.bf16 %v2107_v54, %v2106_v39  ;;  %v2094_v2 = vadd.f32 %v3711_v12, %v2071_v42 }
 0x2ce   : > { %v2072_v43 = vmul.f32 %v3704_v14, %v2049_v10  ;;  %v2047_v0 = vadd.f32 %v2022_v36, %v1829_v27  ;;  %v2116_v45 = vpack.c.bf16 %v2105_v38, %v2104_v37  ;;  %v2092_v46 = vadd.f32 %v3711_v12, %v2069_v35  ;;  %v2900_v36 = vld [vmem:[%s3202_s23 + $0x48] sm:$0xff] }
 0x2cf   : > { %v2110_v58 = vmax.f32 %v2094_v2, 0.0  ;;  %v2902_v2 = vld [vmem:[%s3202_s23 + $0x60] sm:$0xff] }
 0x2d0   : > { %v2095_v47 = vadd.f32 %v3711_v12, %v2072_v43  ;;  %v2070_v48 = vmul.f32 %v3704_v14, %v2047_v0  ;;  %2765 = vmatprep.mubr.msk.bf16.mxu1 %vm1271_vm1, %v2116_v45  ;;  %v2108_v52 = vmax.f32 %v2092_v46, 0.0  ;;  %v3761_v14 = vld [vmem:[%s3904_s8] ss:$0 sm:$0xff] }
 0x2d1   : > { %2766 = vmatmul.mubr.msk.bf16.gmra.mxu1 %vm1271_vm1, %v2117_v49  ;;  %v2901_v0 = vld [vmem:[%s3202_s23 + $0x38] sm:$0xff] }
 0x2d2   : > { %v2093_v50 = vadd.f32 %v3711_v12, %v2070_v48  ;;  %v2111_v55 = vmax.f32 %v2095_v47, 0.0 }
 0x2d4   : > { %v2109_v51 = vmax.f32 %v2093_v50, 0.0  ;;  %v2119_v63 = vpack.c.bf16 %v2111_v55, %v2110_v58 }
 0x2d6   : > { %v2118_v61 = vpack.c.bf16 %v2109_v51, %v2108_v52 }
 0x2d8   : > { %2769 = vmatprep.mubr.msk.bf16.mxu1 %vm1271_vm1, %v2118_v61  ;;  %v2903_v61 = vld [vmem:[%s3202_s23 + $0x50] sm:$0xff] }
 0x2d9   : > { %2770 = vmatmul.mubr.msk.bf16.gmra.mxu1 %vm1271_vm1, %v2119_v63 }
 0x381   : > { %v2759_v12 = vpop.f32.mrf.mxu0 }
 0x382   : > { %v2266_v53 = vmul.f32 %v2759_v12, %v3761_v14 }
 0x383   : > { %v2194_v3 = vpop.f32.mrf.mxu0 }
 0x384   : > { %v2289_v4 = vadd.f32 %v3766_v1, %v2266_v53  ;;  %v2264_v56 = vmul.f32 %v3761_v14, %v2194_v3 }
 0x385   : > { %v2760_v6 = vpop.f32.mrf.mxu0 }
 0x386   : > { %v2305_v8 = vadd.f32 %v2894_v7, %v2289_v4  ;;  %v2287_v9 = vadd.f32 %v3766_v1, %v2264_v56  ;;  %v2267_v11 = vmul.f32 %v2760_v6, %v3761_v14  ;;  %v2904_v56 = vld [vmem:[%s3202_s23 + $0x68] sm:$0xff] }
 0x387   : > { %v2197_v57 = vpop.f32.mrf.mxu0 }
 0x388   : > { %v2321_v13 = vmax.f32 %v2305_v8, 0.0  ;;  %v2303_v16 = vadd.f32 %v2895_v15, %v2287_v9  ;;  %v2290_v17 = vadd.f32 %v3766_v1, %v2267_v11  ;;  %v2265_v18 = vmul.f32 %v3761_v14, %v2197_v57  ;;  %v2905_v57 = vld [vmem:[%s3202_s23 + $0x58] sm:$0xff] }
 0x389   : > { %v2763_v41 = vpop.f32.mrf.mxu1 }
 0x38a   : > { %2337 = vst [vmem:[%s3778_s10 + $0x10] sm:$0xff] %v2321_v13  ;;  %v2319_v19 = vmax.f32 %v2303_v16, 0.0  ;;  %v2306_v44 = vadd.f32 %v2896_v20, %v2290_v17  ;;  %v2288_v5 = vadd.f32 %v3766_v1, %v2265_v18  ;;  %v2270_v59 = vmul.f32 %v2763_v41, %v3761_v14 }
 0x38b   : > { %v2210_v22 = vpop.f32.mrf.mxu1 }
 0x38c   : > { %2335 = vst [vmem:[%s3778_s10] sm:$0xff] %v2319_v19  ;;  %v2322_v21 = vmax.f32 %v2306_v44, 0.0  ;;  %v2304_v24 = vadd.f32 %v2897_v23, %v2288_v5  ;;  %v2293_v25 = vadd.f32 %v3766_v1, %v2270_v59  ;;  %v2268_v26 = vmul.f32 %v3761_v14, %v2210_v22  ;;  %v2906_v19 = vld [vmem:[%s3202_s23 + $0x80] sm:$0xff] }
 0x38d   : > { %v2764_v29 = vpop.f32.mrf.mxu1 }
 0x38e   : > { %2338 = vst [vmem:[%s3778_s10 + $0x18] sm:$0xff] %v2322_v21  ;;  %v2320_v28 = vmax.f32 %v2304_v24, 0.0  ;;  %v2309_v30 = vadd.f32 %v2898_v60, %v2293_v25  ;;  %v2291_v31 = vadd.f32 %v3766_v1, %v2268_v26  ;;  %v2271_v40 = vmul.f32 %v2764_v29, %v3761_v14  ;;  %v2907_v21 = vld [vmem:[%s3202_s23 + $0x70] sm:$0xff]  ;;  %v2908_v26 = vld [vmem:[%s3202_s23 + $0x88] sm:$0xff] }
 0x38f   : > { %v2213_v62 = vpop.f32.mrf.mxu1 }
 0x390   : > { %2336 = vst [vmem:[%s3778_s10 + $0x8] sm:$0xff] %v2320_v28  ;;  %v2325_v32 = vmax.f32 %v2309_v30, 0.0  ;;  %v2307_v34 = vadd.f32 %v2899_v33, %v2291_v31  ;;  %v2294_v54 = vadd.f32 %v3766_v1, %v2271_v40  ;;  %v2269_v35 = vmul.f32 %v3761_v14, %v2213_v62  ;;  %v2909_v30 = vld [vmem:[%s3202_s23 + $0x78] sm:$0xff]  ;;  %s3042_s23 = smov [#allocation6]  }
 0x391   : > { %v2767_v10 = vpop.f32.mrf.mxu1  ;;  %s2942_s30 = sshll.u32 %s3042_s23, 4  ;;  %s2943_s30 = int_to_ptr.vmem [resolvable:$false] %s2942_s30 }
 0x392   : > { %2341 = vst [vmem:[%s3778_s10 + $0x30] sm:$0xff] %v2325_v32  ;;  %v2323_v27 = vmax.f32 %v2307_v34, 0.0  ;;  %v2310_v37 = vadd.f32 %v2900_v36, %v2294_v54  ;;  %v2292_v38 = vadd.f32 %v3766_v1, %v2269_v35  ;;  %v2274_v39 = vmul.f32 %v2767_v10, %v3761_v14  ;;  %s2944_s11 = scalar_lea.vmem %s2943_s30, 4096  ;;  %p2945_p5 = scmp.lt.s32.totalorder %s3841_s29, %s2943_s30 }
 0x393   : > { %v2226_v42 = vpop.f32.mrf.mxu1  ;;  %p2946_p6 = scmp.lt.s32.totalorder %s2944_s11, %s2938_s28 }
 0x394   : > { %2339 = vst [vmem:[%s3778_s10 + $0x20] sm:$0xff] %v2323_v27  ;;  %v2326_v43 = vmax.f32 %v2310_v37, 0.0  ;;  %v2308_v45 = vadd.f32 %v2901_v0, %v2292_v38  ;;  %v2297_v46 = vadd.f32 %v3766_v1, %v2274_v39  ;;  %v2272_v47 = vmul.f32 %v3761_v14, %v2226_v42 }
 0x395   : > { %v2768_v48 = vpop.f32.mrf.mxu1  ;;  %p2947_p7 = por %p2946_p6, %p2945_p5 }
 0x396   : > { %2342 = vst [vmem:[%s3778_s10 + $0x38] sm:$0xff] %v2326_v43  ;;  %v2324_v49 = vmax.f32 %v2308_v45, 0.0  ;;  %v2313_v50 = vadd.f32 %v2902_v2, %v2297_v46  ;;  %v2295_v52 = vadd.f32 %v3766_v1, %v2272_v47  ;;  %v2275_v55 = vmul.f32 %v2768_v48, %v3761_v14 }
 0x397   : > { %v2229_v51 = vpop.f32.mrf.mxu1  ;;  %p2948_p10 = pnand %p2947_p7, %p2941_p4 }
 0x398   : > { %2340 = vst [vmem:[%s3778_s10 + $0x28] sm:$0xff] %v2324_v49  ;;  %v2329_v58 = vmax.f32 %v2313_v50, 0.0  ;;  %v2311_v63 = vadd.f32 %v2903_v61, %v2295_v52  ;;  %v2298_v12 = vadd.f32 %v3766_v1, %v2275_v55  ;;  %v2273_v53 = vmul.f32 %v3761_v14, %v2229_v51 }
 0x399   : > { %v2771_v3 = vpop.f32.mrf.mxu1 }
 0x39a   : > { %2345 = vst [vmem:[%s3778_s10 + $0x50] sm:$0xff] %v2329_v58  ;;  %v2327_v4 = vmax.f32 %v2311_v63, 0.0  ;;  %v2314_v6 = vadd.f32 %v2904_v56, %v2298_v12  ;;  %v2296_v7 = vadd.f32 %v3766_v1, %v2273_v53  ;;  %v2278_v8 = vmul.f32 %v2771_v3, %v3761_v14 }
 0x39b   : > { %v2242_v9 = vpop.f32.mrf.mxu1 }
 0x39c   : > { %2343 = vst [vmem:[%s3778_s10 + $0x40] sm:$0xff] %v2327_v4  ;;  %v2330_v11 = vmax.f32 %v2314_v6, 0.0  ;;  %v2312_v13 = vadd.f32 %v2905_v57, %v2296_v7  ;;  %v2301_v15 = vadd.f32 %v3766_v1, %v2278_v8  ;;  %v2276_v16 = vmul.f32 %v3761_v14, %v2242_v9 }
 0x39d   : > { %v2772_v17 = vpop.f32.mrf.mxu1 }
 0x39e   : > { %2346 = vst [vmem:[%s3778_s10 + $0x58] sm:$0xff] %v2330_v11  ;;  %v2328_v18 = vmax.f32 %v2312_v13, 0.0  ;;  %v2317_v20 = vadd.f32 %v2906_v19, %v2301_v15  ;;  %v2299_v44 = vadd.f32 %v3766_v1, %v2276_v16  ;;  %v2279_v5 = vmul.f32 %v2772_v17, %v3761_v14 }
 0x39f   : > { %v2245_v41 = vpop.f32.mrf.mxu1 }
 0x3a0   : > { %2344 = vst [vmem:[%s3778_s10 + $0x48] sm:$0xff] %v2328_v18  ;;  %v2333_v59 = vmax.f32 %v2317_v20, 0.0  ;;  %v2315_v23 = vadd.f32 %v2907_v21, %v2299_v44  ;;  %v2302_v24 = vadd.f32 %v3766_v1, %v2279_v5  ;;  %v2277_v22 = vmul.f32 %v3761_v14, %v2245_v41 }
 0x3a2   : > { %2349 = vst [vmem:[%s3778_s10 + $0x70] sm:$0xff] %v2333_v59  ;;  %v2331_v25 = vmax.f32 %v2315_v23, 0.0  ;;  %v2318_v28 = vadd.f32 %v2908_v26, %v2302_v24  ;;  %v2300_v29 = vadd.f32 %v3766_v1, %v2277_v22 }
 0x3a4   : > { %2347 = vst [vmem:[%s3778_s10 + $0x60] sm:$0xff] %v2331_v25  ;;  %v2334_v60 = vmax.f32 %v2318_v28, 0.0  ;;  %v2316_v31 = vadd.f32 %v2909_v30, %v2300_v29 }
 0x3a6   : > { %2350 = vst [vmem:[%s3778_s10 + $0x78] sm:$0xff] %v2334_v60  ;;  %v2332_v14 = vmax.f32 %v2316_v31, 0.0 }
 0x3a8   : > { %2348 = vst [vmem:[%s3778_s10 + $0x68] sm:$0xff] %v2332_v14 }
 0x3a9   : > { %2951 = shalt.err (!%p2948_p10)
}
 0x3aa   : > { %s2952_s27 = scalar_lea.hbm %s3839_s21, 2048  ;;  %s2956_s18 = scalar_lea.hbm %s3965_s25, 8192 }
 0x3ab   : > { %p2953_p11 = scmp.ne.s32.totalorder %s3839_s21, %s2952_s27  ;;  %p2957_p8 = scmp.lt.s32.totalorder %s3839_s21, %s3965_s25 }
 0x3ac   : > { %p2958_p0 = scmp.lt.s32.totalorder %s2956_s18, %s2952_s27 }
 0x3ad   : > { %p2954_p13 = pnand %p2953_p11, %p3165_p9 }
 0x3ae   : > { %p2959_p2 = por %p2958_p0, %p2957_p8 }
 0x3af   : > { %p2955_p1 = pneg %p2954_p13 }
 0x3b1   : > { %p2960_p3 = pnand %p2959_p2, %p2955_p1 }
 0x3b3   : > { %2963 = shalt.err (!%p2960_p3)
}
 0x3b4   : > { %s3043_s17 = smov 128   ;;  %s3044_s12 = smov 8  }
 0x3b5   : > { %2783 = dma.vmem_to_hbm [thread:$0]  (%p3165_p9), %s3841_s29, 2048, %s3839_s21, %s2352_s22, %s3043_s17, %s3043_s17, %s3044_s12  }
 0x3b6 PF: > { %s3966_s26 = sld [smem:[#allocation9_spill]]  ;;  %p2794_p4 = scmp.ge.s32.totalorder %s3034_s20, 2 }
 0x3b8   : > { %p2790_p5 = pnand %p2794_p4, %p3171_p12 }
 0x3ba   : > { %p2791_p6 = pneg %p2790_p5 }
 0x3bc   : > { %s2383_s23 = sand.u32 1, %s3966_s26  }
 0x3bd   : > { %s2384_s30 = scalar_lea.sflag [#allocation5], %s2383_s23 }
 0x3be   : > { %3001 = dma.done.wait (%p2791_p6), %s2384_s30, 2048  }
 0x3bf   : > { %3003 = vsyncadd (%p2791_p6), %s2384_s30, 4294965248  ;;  %s26_s20 = sadd.s32 1, %s3034_s20   ;;  %s3968_s16 = sld [smem:[#allocation17_spill]] }
 0x3c0   : > { %p23_p7 = scmp.ge.s32.totalorder %s26_s20, 6   ;;  %s3969_s24 = sld [smem:[#allocation11_spill]] }
 0x3c1   : > { %s3970_s17 = sld [smem:[#allocation12_spill]]  ;;  %s3973_s13 = smov %s3010_s14 }
 0x3c2   : > { %s3971_s18 = sld [smem:[#allocation13_spill]]  ;;  %s3974_s14 = smov %s3014_s15 }
 0x3c3   : > { %s3972_s19 = sld [smem:[#allocation14_spill]]  ;;  %25 = sbr.rel (!%p23_p7) target bundleno = 10 (0xa), region = 107 }
 0x3c5   : > { %s3975_s15 = smov %s3968_s16 }
 0x3c6   : > { %s3976_s16 = smov %s3969_s24 }
 0x3c8   :  { %2389 = vsyncpa [#allocation4], 1 }
 0x3c9   :  { %2391 = vsyncpa [#allocation4 + $0x1], 1 }
 0x3ca   :  { %2392 = vsyncpa [#allocation5], 1 }
 0x3cb   :  { %2394 = vsyncpa [#allocation5 + $0x1], 1 }

</bundles_post_ra>
